<compile_context>
chip_gen: v5e
topology: v5e:2x2
jax: 0.10.0
libtpu: 0.0.40
codegen_flags: <defaults>
</compile_context>

<pallas_src>
import math

import jax
import jax.numpy as jnp
import numpy as np
from jax import lax
from jax.experimental import pallas as pl
from jax.experimental.pallas import tpu as pltpu


def _cross_attn_kernel(q_ref, k_ref, v_ref, bias_ref, wo_ref, bo_ref, out_ref,
                       m_sc, l_sc, acc_sc):
    """One grid step = (batch b, query-tile qi, key-tile ki); ki is the reduction axis."""
    kt = pl.program_id(2)

    @pl.when(kt == 0)
    def _():
        m_sc[...] = jnp.full_like(m_sc, -jnp.inf)
        l_sc[...] = jnp.zeros_like(l_sc)
        acc_sc[...] = jnp.zeros_like(acc_sc)

    q = q_ref[0]          # (H, TQ, hd) bf16, 1/sqrt(hd) already folded into Wq
    k = k_ref[0]          # (H, TK, hd) bf16
    v = v_ref[0]          # (H, TK, hd) bf16
    bias = bias_ref[0]    # (1, TK)     f32 additive key-padding bias (0 / -1e9)

    # Head-batched QK^T via last-dim contraction (no transposes / lane slicing).
    s = lax.dot_general(q, k, dimension_numbers=(((2,), (2,)), ((0,), (0,))),
                        preferred_element_type=jnp.float32)         # (H, TQ, TK)
    s = s + bias                                                     # broadcast over H, TQ

    # Online softmax running stats (f32).
    m_prev = m_sc[...]                                               # (H, TQ, 1)
    m_new = jnp.maximum(m_prev, jnp.max(s, axis=-1, keepdims=True))
    alpha = jnp.exp(m_prev - m_new)
    p = jnp.exp(s - m_new)                                           # (H, TQ, TK)
    l_sc[...] = alpha * l_sc[...] + jnp.sum(p, axis=-1, keepdims=True)
    pv = lax.dot_general(p.astype(v.dtype), v,
                         dimension_numbers=(((2,), (1,)), ((0,), (0,))),
                         preferred_element_type=jnp.float32)         # (H, TQ, hd)
    acc_sc[...] = alpha * acc_sc[...] + pv
    m_sc[...] = m_new

    @pl.when(kt == pl.num_programs(2) - 1)
    def _():
        # Normalize once; approx reciprocal goes to the EUP (free slot). ~1e-3 rel error,
        # well inside bf16 attention tolerance.
        inv_l = pl.reciprocal(l_sc[...], approx=True)                # (H, TQ, 1)
        ctx = (acc_sc[...] * inv_l).astype(jnp.bfloat16)             # (H, TQ, hd)

        # Output projection accumulated over heads. Only leading-axis (head) indexing of
        # both ctx and the pre-reshaped (H, hd, hidden) Wo -> no lane slicing / concat.
        # Live set per iteration is just the (TQ, hidden) accumulator + one head's part,
        # so a static unroll does not blow up vreg pressure here.
        num_heads = wo_ref.shape[0]
        out = bo_ref[...].astype(jnp.float32)                        # (1, hidden) -> broadcast
        for h in range(num_heads):
            out = out + jnp.dot(ctx[h], wo_ref[h],
                                preferred_element_type=jnp.float32)  # (TQ, hidden)
        out_ref[0] = out.astype(out_ref.dtype)


def multi_cross_attention(x, y, log_seqs, wq, wk, wv, wo, bo, *, num_heads,
                          q_tile=None, k_tile=None):
    """x: (B, Sq, hidden), y: (B, Sk, hidden), log_seqs: (B, Sk) int (0 = padded key).
    wq/wk/wv: (all_head, hidden) torch Linear layout; wo: (hidden, all_head); bo: (hidden,)."""
    B, Sq, hidden = x.shape
    _, Sk, _ = y.shape
    all_head = wq.shape[0]
    assert all_head % num_heads == 0
    H = num_heads
    hd = all_head // H

    # ---- per-generation VMEM budgeting (items 2 & 4) ----
    try:
        vmem_cap = int(pltpu.get_tpu_info().vmem_capacity_bytes)
    except Exception:
        vmem_cap = 64 * 1024 * 1024                 # conservative fallback (v7x-sized VMEM)
    small_vmem = vmem_cap <= 64 * 1024 * 1024
    if q_tile is None:
        q_tile = 256 if small_vmem else 512         # multiple of 8 (sublane dim)
    if k_tile is None:
        k_tile = 512 if small_vmem else 1024        # multiple of 128 (mask lane dim)
    vmem_limit = min(vmem_cap * 3 // 4, 100 * 1024 * 1024)   # ~48 MiB v7x, ~96 MiB v5e/v6e

    # ---- tiling with explicit zero-padding (item 5): never fall back to "whole Sq" ----
    if Sq <= q_tile:
        q_tile, Sq_pad = Sq, Sq
    else:
        Sq_pad = ((Sq + q_tile - 1) // q_tile) * q_tile
    if Sk <= k_tile:
        k_tile, Sk_pad = Sk, Sk
    else:
        Sk_pad = ((Sk + k_tile - 1) // k_tile) * k_tile

    if Sq_pad != Sq:
        x = jnp.pad(x, ((0, 0), (0, Sq_pad - Sq), (0, 0)))
    if Sk_pad != Sk:
        y = jnp.pad(y, ((0, 0), (0, Sk_pad - Sk), (0, 0)))
        log_seqs = jnp.pad(log_seqs, ((0, 0), (0, Sk_pad - Sk)))     # pad value 0 => masked

    # ---- Q/K/V projections once per token via XLA GEMMs, per-head layout (items 1 & 7);
    #      softmax scale folded into Wq on the host (item 10). ----
    scale = jnp.float32(1.0 / math.sqrt(hd))

    def to_heads(t):                                  # (B, S, all_head) -> (B, H, S, hd) bf16
        b_, s_, _ = t.shape
        return t.reshape(b_, s_, H, hd).transpose(0, 2, 1, 3).astype(jnp.bfloat16)

    q = to_heads(x.astype(jnp.float32) @ (wq.astype(jnp.float32) * scale).T)
    k = to_heads(y.astype(jnp.float32) @ wk.astype(jnp.float32).T)
    v = to_heads(y.astype(jnp.float32) @ wv.astype(jnp.float32).T)

    # Additive key-padding bias (padded key positions get -1e9 as well).
    bias = jnp.where(log_seqs == 0, jnp.float32(-1e9), jnp.float32(0.0)).reshape(B, 1, Sk_pad)

    # Wo pre-reshaped so the kernel only indexes its leading head axis; bias as (1, hidden).
    wo3 = wo.T.reshape(H, hd, hidden).astype(jnp.bfloat16)
    bo2 = bo.reshape(1, hidden).astype(jnp.float32)

    grid = (B, Sq_pad // q_tile, Sk_pad // k_tile)

    def build(single_buffer_weights):
        if single_buffer_weights:
            # Constant-index resident operands: single-buffer to halve their VMEM cost (item 3).
            wo_spec = pl.BlockSpec((H, hd, hidden), lambda b, qi, ki: (0, 0, 0),
                                   pipeline_mode=pl.Buffered(1))
            bo_spec = pl.BlockSpec((1, hidden), lambda b, qi, ki: (0, 0),
                                   pipeline_mode=pl.Buffered(1))
        else:
            wo_spec = pl.BlockSpec((H, hd, hidden), lambda b, qi, ki: (0, 0, 0))
            bo_spec = pl.BlockSpec((1, hidden), lambda b, qi, ki: (0, 0))

        return pl.pallas_call(
            _cross_attn_kernel,
            out_shape=jax.ShapeDtypeStruct((B, Sq_pad, hidden), jnp.float32),
            grid=grid,
            in_specs=[
                pl.BlockSpec((1, H, q_tile, hd), lambda b, qi, ki: (b, 0, qi, 0)),   # Q
                pl.BlockSpec((1, H, k_tile, hd), lambda b, qi, ki: (b, 0, ki, 0)),   # K
                pl.BlockSpec((1, H, k_tile, hd), lambda b, qi, ki: (b, 0, ki, 0)),   # V
                pl.BlockSpec((1, 1, k_tile), lambda b, qi, ki: (b, 0, ki)),          # mask bias
                wo_spec,                                                             # Wo (resident)
                bo_spec,                                                             # bo (resident)
            ],
            out_specs=pl.BlockSpec((1, q_tile, hidden), lambda b, qi, ki: (b, qi, 0)),
            scratch_shapes=[
                pltpu.VMEM((H, q_tile, 1), jnp.float32),    # running max
                pltpu.VMEM((H, q_tile, 1), jnp.float32),    # running denom
                pltpu.VMEM((H, q_tile, hd), jnp.float32),   # running context
            ],
            compiler_params=pltpu.CompilerParams(
                dimension_semantics=("parallel", "parallel", "arbitrary"),
                vmem_limit_bytes=vmem_limit),
        )

    try:
        out = jax.block_until_ready(build(True)(q, k, v, bias, wo3, bo2))
    except Exception:
        # Fallback for JAX builds without BlockSpec pipeline_mode / Buffered(1) support.
        out = build(False)(q, k, v, bias, wo3, bo2)

    return out[:, :Sq, :]


def reference(x, y, log_seqs, wq, wk, wv, wo, bo, *, num_heads):
    """Pure-JAX (f32) transcription of the PyTorch forward (for verification)."""
    B, Sq, hidden = x.shape
    all_head = wq.shape[0]
    hd = all_head // num_heads
    q = (x @ wq.T).reshape(B, Sq, num_heads, hd).transpose(0, 2, 1, 3)
    k = (y @ wk.T).reshape(B, -1, num_heads, hd).transpose(0, 2, 1, 3)
    v = (y @ wv.T).reshape(B, -1, num_heads, hd).transpose(0, 2, 1, 3)
    mask = (log_seqs == 0)[:, None, None, :]                     # (B,1,1,Sk)
    scores = jnp.einsum("bhqd,bhkd->bhqk", q, k)
    scores = jnp.where(mask, -1e9, scores)
    p = jax.nn.softmax(scores / math.sqrt(hd), axis=-1)
    ctx = jnp.einsum("bhqk,bhkd->bhqd", p, v)
    ctx = ctx.transpose(0, 2, 1, 3).reshape(B, Sq, all_head)
    return ctx @ wo.T + bo


if __name__ == "__main__":
    B, S, hidden, all_head, num_heads = 2, 8, 32, 32, 4

    key = jax.random.PRNGKey(0)
    kx, ky, kq, kk, kv, ko, kb, km = jax.random.split(key, 8)

    x = jax.random.normal(kx, (B, S, hidden), dtype=jnp.float32)
    y = jax.random.normal(ky, (B, S, hidden), dtype=jnp.float32)
    # log_seqs: integer ids, zeros mark padded key positions. Guarantee >=1 unmasked key
    # per row (a fully-masked row is a degenerate case in the torch module as well).
    log_seqs = jax.random.randint(km, (B, S), 0, 5, dtype=jnp.int32)
    log_seqs = log_seqs.at[:, 0].set(1)

    wq = 0.05 * jax.random.normal(kq, (all_head, hidden), dtype=jnp.float32)
    wk = 0.05 * jax.random.normal(kk, (all_head, hidden), dtype=jnp.float32)
    wv = 0.05 * jax.random.normal(kv, (all_head, hidden), dtype=jnp.float32)
    wo = 0.05 * jax.random.normal(ko, (hidden, all_head), dtype=jnp.float32)
    bo = 0.05 * jax.random.normal(kb, (hidden,), dtype=jnp.float32)

    out = multi_cross_attention(x, y, log_seqs, wq, wk, wv, wo, bo, num_heads=num_heads)
    out = jax.block_until_ready(out)

    ref = reference(x, y, log_seqs, wq, wk, wv, wo, bo, num_heads=num_heads)
    # bf16 matmul inputs with f32 accumulation -> relaxed tolerance vs f32 reference.
    np.testing.assert_allclose(np.asarray(out), np.asarray(ref), rtol=2e-2, atol=2e-2)
    print("KERNEL_OK")
</pallas_src>

<mosaic_0001>
module attributes {stable_mosaic.version = 11 : i64} {
  func.func @_cross_attn_kernel(%arg0: i32, %arg1: i32, %arg2: i32, %arg3: memref<1x4x8x8xbf16, #tpu.memory_space<vmem>>, %arg4: memref<1x4x8x8xbf16, #tpu.memory_space<vmem>>, %arg5: memref<1x4x8x8xbf16, #tpu.memory_space<vmem>>, %arg6: memref<1x1x8xf32, #tpu.memory_space<vmem>>, %arg7: memref<4x8x32xbf16, #tpu.memory_space<vmem>>, %arg8: memref<1x32xf32, #tpu.memory_space<vmem>>, %arg9: memref<1x8x32xf32, #tpu.memory_space<vmem>>, %arg10: memref<4x8x1xf32, #tpu.memory_space<vmem>>, %arg11: memref<4x8x1xf32, #tpu.memory_space<vmem>>, %arg12: memref<4x8x8xf32, #tpu.memory_space<vmem>>) attributes {dimension_semantics = [#tpu.dimension_semantics<parallel>, #tpu.dimension_semantics<parallel>, #tpu.dimension_semantics<arbitrary>], iteration_bounds = array<i64: 2, 1, 1>, scalar_prefetch = 0 : i64, scratch_operands = 3 : i64, tpu.core_type = #tpu.core_type<tc>, window_params = [{transform_indices = @transform_0, window_bounds = array<i64: 1, 4, 8, 8>}, {transform_indices = @transform_1, window_bounds = array<i64: 1, 4, 8, 8>}, {transform_indices = @transform_2, window_bounds = array<i64: 1, 4, 8, 8>}, {transform_indices = @transform_3, window_bounds = array<i64: 1, 1, 8>}, {pipeline_mode = #tpu.pipeline_mode<synchronous>, transform_indices = @transform_4, window_bounds = array<i64: 4, 8, 32>}, {pipeline_mode = #tpu.pipeline_mode<synchronous>, transform_indices = @transform_5, window_bounds = array<i64: 1, 32>}, {transform_indices = @transform_6, window_bounds = array<i64: 1, 8, 32>}]} {
    %c0_i32 = arith.constant 0 : i32
    %0 = arith.cmpi eq, %arg2, %c0_i32 : i32
    %1 = arith.extui %0 : i1 to i32
    %c0_i32_0 = arith.constant 0 : i32
    %2 = arith.cmpi ne, %1, %c0_i32_0 : i32
    scf.if %2 {
      %cst_38 = arith.constant 0xFF800000 : f32
      %41 = vector.broadcast %cst_38 : f32 to vector<4x8x1xf32>
      %c0_39 = arith.constant 0 : index
      %c0_40 = arith.constant 0 : index
      %c0_41 = arith.constant 0 : index
      %42 = vector.load %arg10[%c0_39, %c0_40, %c0_41] : memref<4x8x1xf32, #tpu.memory_space<vmem>>, vector<4x8x1xf32>
      tpu.vector_store %arg10[%c0_39, %c0_40, %c0_41], %41 {strides = array<i32>} : memref<4x8x1xf32, #tpu.memory_space<vmem>>, vector<4x8x1xf32>,
      %cst_42 = arith.constant 0.000000e+00 : f32
      %43 = vector.broadcast %cst_42 : f32 to vector<4x8x1xf32>
      %c0_43 = arith.constant 0 : index
      %c0_44 = arith.constant 0 : index
      %c0_45 = arith.constant 0 : index
      %44 = vector.load %arg11[%c0_43, %c0_44, %c0_45] : memref<4x8x1xf32, #tpu.memory_space<vmem>>, vector<4x8x1xf32>
      tpu.vector_store %arg11[%c0_43, %c0_44, %c0_45], %43 {strides = array<i32>} : memref<4x8x1xf32, #tpu.memory_space<vmem>>, vector<4x8x1xf32>,
      %cst_46 = arith.constant 0.000000e+00 : f32
      %45 = vector.broadcast %cst_46 : f32 to vector<4x8x8xf32>
      %c0_47 = arith.constant 0 : index
      %c0_48 = arith.constant 0 : index
      %c0_49 = arith.constant 0 : index
      %46 = vector.load %arg12[%c0_47, %c0_48, %c0_49] : memref<4x8x8xf32, #tpu.memory_space<vmem>>, vector<4x8x8xf32>
      tpu.vector_store %arg12[%c0_47, %c0_48, %c0_49], %45 {strides = array<i32>} : memref<4x8x8xf32, #tpu.memory_space<vmem>>, vector<4x8x8xf32>,
    } else {
    }
    %c0 = arith.constant 0 : index
    %c0_1 = arith.constant 0 : index
    %c0_2 = arith.constant 0 : index
    %c0_3 = arith.constant 0 : index
    %3 = vector.load %arg3[%c0, %c0_1, %c0_2, %c0_3] : memref<1x4x8x8xbf16, #tpu.memory_space<vmem>>, vector<1x4x8x8xbf16>
    %4 = vector.shape_cast %3 : vector<1x4x8x8xbf16> to vector<4x8x8xbf16>
    %c0_4 = arith.constant 0 : index
    %c0_5 = arith.constant 0 : index
    %c0_6 = arith.constant 0 : index
    %c0_7 = arith.constant 0 : index
    %5 = vector.load %arg4[%c0_4, %c0_5, %c0_6, %c0_7] : memref<1x4x8x8xbf16, #tpu.memory_space<vmem>>, vector<1x4x8x8xbf16>
    %6 = vector.shape_cast %5 : vector<1x4x8x8xbf16> to vector<4x8x8xbf16>
    %c0_8 = arith.constant 0 : index
    %c0_9 = arith.constant 0 : index
    %c0_10 = arith.constant 0 : index
    %c0_11 = arith.constant 0 : index
    %7 = vector.load %arg5[%c0_8, %c0_9, %c0_10, %c0_11] : memref<1x4x8x8xbf16, #tpu.memory_space<vmem>>, vector<1x4x8x8xbf16>
    %8 = vector.shape_cast %7 : vector<1x4x8x8xbf16> to vector<4x8x8xbf16>
    %c0_12 = arith.constant 0 : index
    %c0_13 = arith.constant 0 : index
    %c0_14 = arith.constant 0 : index
    %9 = vector.load %arg6[%c0_12, %c0_13, %c0_14] : memref<1x1x8xf32, #tpu.memory_space<vmem>>, vector<1x1x8xf32>
    %10 = vector.shape_cast %9 : vector<1x1x8xf32> to vector<1x8xf32>
    %cst = arith.constant dense<0.000000e+00> : vector<4x8x8xf32>
    %11 = tpu.matmul %4, %6, %cst {dimension_numbers = #tpu.dot_dimension_numbers<[2], [2], [1], [1], [0, 0, 0, 1, 1, 1], [0], [0]>} : vector<4x8x8xbf16>, vector<4x8x8xbf16>, vector<4x8x8xf32> -> vector<4x8x8xf32>
    %12 = vector.shape_cast %10 : vector<1x8xf32> to vector<1x1x8xf32>
    %13 = vector.broadcast %12 : vector<1x1x8xf32> to vector<4x8x8xf32>
    %14 = arith.addf %11, %13 : vector<4x8x8xf32>
    %c0_15 = arith.constant 0 : index
    %c0_16 = arith.constant 0 : index
    %c0_17 = arith.constant 0 : index
    %15 = vector.load %arg10[%c0_15, %c0_16, %c0_17] : memref<4x8x1xf32, #tpu.memory_space<vmem>>, vector<4x8x1xf32>
    %cst_18 = arith.constant dense<0xFF800000> : vector<4x8xf32>
    %16 = vector.multi_reduction <maximumf>, %14, %cst_18 [2] : vector<4x8x8xf32> to vector<4x8xf32>
    %17 = vector.shape_cast %16 : vector<4x8xf32> to vector<4x8x1xf32>
    %18 = arith.maximumf %15, %17 : vector<4x8x1xf32>
    %19 = arith.subf %15, %18 : vector<4x8x1xf32>
    %20 = math.exp %19 : vector<4x8x1xf32>
    %21 = vector.broadcast %18 : vector<4x8x1xf32> to vector<4x8x8xf32>
    %22 = arith.subf %14, %21 : vector<4x8x8xf32>
    %23 = math.exp %22 : vector<4x8x8xf32>
    %c0_19 = arith.constant 0 : index
    %c0_20 = arith.constant 0 : index
    %c0_21 = arith.constant 0 : index
    %24 = vector.load %arg11[%c0_19, %c0_20, %c0_21] : memref<4x8x1xf32, #tpu.memory_space<vmem>>, vector<4x8x1xf32>
    %25 = arith.mulf %20, %24 : vector<4x8x1xf32>
    %cst_22 = arith.constant dense<0.000000e+00> : vector<4x8xf32>
    %26 = vector.multi_reduction <add>, %23, %cst_22 [2] : vector<4x8x8xf32> to vector<4x8xf32>
    %27 = vector.shape_cast %26 : vector<4x8xf32> to vector<4x8x1xf32>
    %28 = arith.addf %25, %27 : vector<4x8x1xf32>
    %c0_23 = arith.constant 0 : index
    %c0_24 = arith.constant 0 : index
    %c0_25 = arith.constant 0 : index
    %29 = vector.load %arg11[%c0_23, %c0_24, %c0_25] : memref<4x8x1xf32, #tpu.memory_space<vmem>>, vector<4x8x1xf32>
    tpu.vector_store %arg11[%c0_23, %c0_24, %c0_25], %28 {strides = array<i32>} : memref<4x8x1xf32, #tpu.memory_space<vmem>>, vector<4x8x1xf32>,
    %30 = arith.truncf %23 : vector<4x8x8xf32> to vector<4x8x8xbf16>
    %cst_26 = arith.constant dense<0.000000e+00> : vector<4x8x8xf32>
    %31 = tpu.matmul %30, %8, %cst_26 {dimension_numbers = #tpu.dot_dimension_numbers<[2], [1], [1], [2], [0, 0, 0, 1, 1, 2], [0], [0]>} : vector<4x8x8xbf16>, vector<4x8x8xbf16>, vector<4x8x8xf32> -> vector<4x8x8xf32>
    %c0_27 = arith.constant 0 : index
    %c0_28 = arith.constant 0 : index
    %c0_29 = arith.constant 0 : index
    %32 = vector.load %arg12[%c0_27, %c0_28, %c0_29] : memref<4x8x8xf32, #tpu.memory_space<vmem>>, vector<4x8x8xf32>
    %33 = vector.broadcast %20 : vector<4x8x1xf32> to vector<4x8x8xf32>
    %34 = arith.mulf %33, %32 : vector<4x8x8xf32>
    %35 = arith.addf %34, %31 : vector<4x8x8xf32>
    %c0_30 = arith.constant 0 : index
    %c0_31 = arith.constant 0 : index
    %c0_32 = arith.constant 0 : index
    %36 = vector.load %arg12[%c0_30, %c0_31, %c0_32] : memref<4x8x8xf32, #tpu.memory_space<vmem>>, vector<4x8x8xf32>
    tpu.vector_store %arg12[%c0_30, %c0_31, %c0_32], %35 {strides = array<i32>} : memref<4x8x8xf32, #tpu.memory_space<vmem>>, vector<4x8x8xf32>,
    %c0_33 = arith.constant 0 : index
    %c0_34 = arith.constant 0 : index
    %c0_35 = arith.constant 0 : index
    %37 = vector.load %arg10[%c0_33, %c0_34, %c0_35] : memref<4x8x1xf32, #tpu.memory_space<vmem>>, vector<4x8x1xf32>
    tpu.vector_store %arg10[%c0_33, %c0_34, %c0_35], %18 {strides = array<i32>} : memref<4x8x1xf32, #tpu.memory_space<vmem>>, vector<4x8x1xf32>,
    %c0_i32_36 = arith.constant 0 : i32
    %38 = arith.cmpi eq, %arg2, %c0_i32_36 : i32
    %39 = arith.extui %38 : i1 to i32
    %c0_i32_37 = arith.constant 0 : i32
    %40 = arith.cmpi ne, %39, %c0_i32_37 : i32
    scf.if %40 {
      %c0_38 = arith.constant 0 : index
      %c0_39 = arith.constant 0 : index
      %c0_40 = arith.constant 0 : index
      %41 = vector.load %arg11[%c0_38, %c0_39, %c0_40] : memref<4x8x1xf32, #tpu.memory_space<vmem>>, vector<4x8x1xf32>
      %42 = tpu.reciprocal %41 {approx = true} : vector<4x8x1xf32> -> vector<4x8x1xf32>
      %c0_41 = arith.constant 0 : index
      %c0_42 = arith.constant 0 : index
      %c0_43 = arith.constant 0 : index
      %43 = vector.load %arg12[%c0_41, %c0_42, %c0_43] : memref<4x8x8xf32, #tpu.memory_space<vmem>>, vector<4x8x8xf32>
      %44 = vector.broadcast %42 : vector<4x8x1xf32> to vector<4x8x8xf32>
      %45 = arith.mulf %43, %44 : vector<4x8x8xf32>
      %46 = arith.truncf %45 : vector<4x8x8xf32> to vector<4x8x8xbf16>
      %c0_44 = arith.constant 0 : index
      %c0_45 = arith.constant 0 : index
      %47 = vector.load %arg8[%c0_44, %c0_45] : memref<1x32xf32, #tpu.memory_space<vmem>>, vector<1x32xf32>
      %48 = vector.extract_strided_slice %46 {offsets = [0, 0, 0], sizes = [1, 8, 8], strides = [1, 1, 1]} : vector<4x8x8xbf16> to vector<1x8x8xbf16>
      %49 = vector.shape_cast %48 : vector<1x8x8xbf16> to vector<8x8xbf16>
      %c0_46 = arith.constant 0 : index
      %c0_47 = arith.constant 0 : index
      %c0_48 = arith.constant 0 : index
      %50 = vector.load %arg7[%c0_46, %c0_47, %c0_48] : memref<4x8x32xbf16, #tpu.memory_space<vmem>>, vector<1x8x32xbf16>
      %51 = vector.shape_cast %50 : vector<1x8x32xbf16> to vector<8x32xbf16>
      %cst_49 = arith.constant dense<0.000000e+00> : vector<8x32xf32>
      %52 = tpu.matmul %49, %51, %cst_49 {dimension_numbers = #tpu.dot_dimension_numbers<[1], [0], [0], [1], [0, 0, 1, 1], [], []>} : vector<8x8xbf16>, vector<8x32xbf16>, vector<8x32xf32> -> vector<8x32xf32>
      %53 = vector.broadcast %47 : vector<1x32xf32> to vector<8x32xf32>
      %54 = arith.addf %53, %52 : vector<8x32xf32>
      %55 = vector.extract_strided_slice %46 {offsets = [1, 0, 0], sizes = [1, 8, 8], strides = [1, 1, 1]} : vector<4x8x8xbf16> to vector<1x8x8xbf16>
      %56 = vector.shape_cast %55 : vector<1x8x8xbf16> to vector<8x8xbf16>
      %c1 = arith.constant 1 : index
      %c0_50 = arith.constant 0 : index
      %c0_51 = arith.constant 0 : index
      %57 = vector.load %arg7[%c1, %c0_50, %c0_51] : memref<4x8x32xbf16, #tpu.memory_space<vmem>>, vector<1x8x32xbf16>
      %58 = vector.shape_cast %57 : vector<1x8x32xbf16> to vector<8x32xbf16>
      %cst_52 = arith.constant dense<0.000000e+00> : vector<8x32xf32>
      %59 = tpu.matmul %56, %58, %cst_52 {dimension_numbers = #tpu.dot_dimension_numbers<[1], [0], [0], [1], [0, 0, 1, 1], [], []>} : vector<8x8xbf16>, vector<8x32xbf16>, vector<8x32xf32> -> vector<8x32xf32>
      %60 = arith.addf %54, %59 : vector<8x32xf32>
      %61 = vector.extract_strided_slice %46 {offsets = [2, 0, 0], sizes = [1, 8, 8], strides = [1, 1, 1]} : vector<4x8x8xbf16> to vector<1x8x8xbf16>
      %62 = vector.shape_cast %61 : vector<1x8x8xbf16> to vector<8x8xbf16>
      %c2 = arith.constant 2 : index
      %c0_53 = arith.constant 0 : index
      %c0_54 = arith.constant 0 : index
      %63 = vector.load %arg7[%c2, %c0_53, %c0_54] : memref<4x8x32xbf16, #tpu.memory_space<vmem>>, vector<1x8x32xbf16>
      %64 = vector.shape_cast %63 : vector<1x8x32xbf16> to vector<8x32xbf16>
      %cst_55 = arith.constant dense<0.000000e+00> : vector<8x32xf32>
      %65 = tpu.matmul %62, %64, %cst_55 {dimension_numbers = #tpu.dot_dimension_numbers<[1], [0], [0], [1], [0, 0, 1, 1], [], []>} : vector<8x8xbf16>, vector<8x32xbf16>, vector<8x32xf32> -> vector<8x32xf32>
      %66 = arith.addf %60, %65 : vector<8x32xf32>
      %67 = vector.extract_strided_slice %46 {offsets = [3, 0, 0], sizes = [1, 8, 8], strides = [1, 1, 1]} : vector<4x8x8xbf16> to vector<1x8x8xbf16>
      %68 = vector.shape_cast %67 : vector<1x8x8xbf16> to vector<8x8xbf16>
      %c3 = arith.constant 3 : index
      %c0_56 = arith.constant 0 : index
      %c0_57 = arith.constant 0 : index
      %69 = vector.load %arg7[%c3, %c0_56, %c0_57] : memref<4x8x32xbf16, #tpu.memory_space<vmem>>, vector<1x8x32xbf16>
      %70 = vector.shape_cast %69 : vector<1x8x32xbf16> to vector<8x32xbf16>
      %cst_58 = arith.constant dense<0.000000e+00> : vector<8x32xf32>
      %71 = tpu.matmul %68, %70, %cst_58 {dimension_numbers = #tpu.dot_dimension_numbers<[1], [0], [0], [1], [0, 0, 1, 1], [], []>} : vector<8x8xbf16>, vector<8x32xbf16>, vector<8x32xf32> -> vector<8x32xf32>
      %72 = arith.addf %66, %71 : vector<8x32xf32>
      %c0_59 = arith.constant 0 : index
      %c0_60 = arith.constant 0 : index
      %c0_61 = arith.constant 0 : index
      %73 = vector.load %arg9[%c0_59, %c0_60, %c0_61] : memref<1x8x32xf32, #tpu.memory_space<vmem>>, vector<1x8x32xf32>
      %74 = vector.shape_cast %73 : vector<1x8x32xf32> to vector<8x32xf32>
      %75 = vector.shape_cast %72 : vector<8x32xf32> to vector<1x8x32xf32>
      tpu.vector_store %arg9[%c0_59, %c0_60, %c0_61], %75 {strides = array<i32>} : memref<1x8x32xf32, #tpu.memory_space<vmem>>, vector<1x8x32xf32>,
    } else {
    }
    return
  }
  func.func @transform_0(%arg0: i32, %arg1: i32, %arg2: i32) -> (i32, i32, i32, i32) {
    %c0_i32 = arith.constant 0 : i32
    %c0_i32_0 = arith.constant 0 : i32
    %c0_i32_1 = arith.constant 0 : i32
    return %arg0, %c0_i32, %arg1, %c0_i32_0 : i32, i32, i32, i32
  }
  func.func @transform_1(%arg0: i32, %arg1: i32, %arg2: i32) -> (i32, i32, i32, i32) {
    %c0_i32 = arith.constant 0 : i32
    %c0_i32_0 = arith.constant 0 : i32
    %c0_i32_1 = arith.constant 0 : i32
    return %arg0, %c0_i32, %arg2, %c0_i32_0 : i32, i32, i32, i32
  }
  func.func @transform_2(%arg0: i32, %arg1: i32, %arg2: i32) -> (i32, i32, i32, i32) {
    %c0_i32 = arith.constant 0 : i32
    %c0_i32_0 = arith.constant 0 : i32
    %c0_i32_1 = arith.constant 0 : i32
    return %arg0, %c0_i32, %arg2, %c0_i32_0 : i32, i32, i32, i32
  }
  func.func @transform_3(%arg0: i32, %arg1: i32, %arg2: i32) -> (i32, i32, i32) {
    %c0_i32 = arith.constant 0 : i32
    %c0_i32_0 = arith.constant 0 : i32
    return %arg0, %c0_i32, %arg2 : i32, i32, i32
  }
  func.func @transform_4(%arg0: i32, %arg1: i32, %arg2: i32) -> (i32, i32, i32) {
    %c0_i32 = arith.constant 0 : i32
    %c0_i32_0 = arith.constant 0 : i32
    %c0_i32_1 = arith.constant 0 : i32
    %c0_i32_2 = arith.constant 0 : i32
    return %c0_i32, %c0_i32_0, %c0_i32_1 : i32, i32, i32
  }
  func.func @transform_5(%arg0: i32, %arg1: i32, %arg2: i32) -> (i32, i32) {
    %c0_i32 = arith.constant 0 : i32
    %c0_i32_0 = arith.constant 0 : i32
    %c0_i32_1 = arith.constant 0 : i32
    return %c0_i32, %c0_i32_0 : i32, i32
  }
  func.func @transform_6(%arg0: i32, %arg1: i32, %arg2: i32) -> (i32, i32, i32) {
    %c0_i32 = arith.constant 0 : i32
    %c0_i32_0 = arith.constant 0 : i32
    return %arg0, %arg1, %c0_i32 : i32, i32, i32
  }
}

module attributes {stable_mosaic.version = 11 : i64} {
  func.func @_cross_attn_kernel(%arg0: i32, %arg1: i32, %arg2: i32, %arg3: memref<1x4x8x8xbf16, #tpu.memory_space<vmem>>, %arg4: memref<1x4x8x8xbf16, #tpu.memory_space<vmem>>, %arg5: memref<1x4x8x8xbf16, #tpu.memory_space<vmem>>, %arg6: memref<1x1x8xf32, #tpu.memory_space<vmem>>, %arg7: memref<4x8x32xbf16, #tpu.memory_space<vmem>>, %arg8: memref<1x32xf32, #tpu.memory_space<vmem>>, %arg9: memref<1x8x32xf32, #tpu.memory_space<vmem>>, %arg10: memref<4x8x1xf32, #tpu.memory_space<vmem>>, %arg11: memref<4x8x1xf32, #tpu.memory_space<vmem>>, %arg12: memref<4x8x8xf32, #tpu.memory_space<vmem>>) attributes {dimension_semantics = [#tpu.dimension_semantics<parallel>, #tpu.dimension_semantics<parallel>, #tpu.dimension_semantics<arbitrary>], iteration_bounds = array<i64: 2, 1, 1>, scalar_prefetch = 0 : i64, scratch_operands = 3 : i64, tpu.core_type = #tpu.core_type<tc>, window_params = [{transform_indices = @transform_0, window_bounds = array<i64: 1, 4, 8, 8>}, {transform_indices = @transform_1, window_bounds = array<i64: 1, 4, 8, 8>}, {transform_indices = @transform_2, window_bounds = array<i64: 1, 4, 8, 8>}, {transform_indices = @transform_3, window_bounds = array<i64: 1, 1, 8>}, {pipeline_mode = #tpu.pipeline_mode<synchronous>, transform_indices = @transform_4, window_bounds = array<i64: 4, 8, 32>}, {pipeline_mode = #tpu.pipeline_mode<synchronous>, transform_indices = @transform_5, window_bounds = array<i64: 1, 32>}, {transform_indices = @transform_6, window_bounds = array<i64: 1, 8, 32>}]} {
    %c0_i32 = arith.constant 0 : i32
    %0 = arith.cmpi eq, %arg2, %c0_i32 : i32
    %1 = arith.extui %0 : i1 to i32
    %c0_i32_0 = arith.constant 0 : i32
    %2 = arith.cmpi ne, %1, %c0_i32_0 : i32
    scf.if %2 {
      %cst_38 = arith.constant 0xFF800000 : f32
      %41 = vector.broadcast %cst_38 : f32 to vector<4x8x1xf32>
      %c0_39 = arith.constant 0 : index
      %c0_40 = arith.constant 0 : index
      %c0_41 = arith.constant 0 : index
      %42 = vector.load %arg10[%c0_39, %c0_40, %c0_41] : memref<4x8x1xf32, #tpu.memory_space<vmem>>, vector<4x8x1xf32>
      tpu.vector_store %arg10[%c0_39, %c0_40, %c0_41], %41 {strides = array<i32>} : memref<4x8x1xf32, #tpu.memory_space<vmem>>, vector<4x8x1xf32>,
      %cst_42 = arith.constant 0.000000e+00 : f32
      %43 = vector.broadcast %cst_42 : f32 to vector<4x8x1xf32>
      %c0_43 = arith.constant 0 : index
      %c0_44 = arith.constant 0 : index
      %c0_45 = arith.constant 0 : index
      %44 = vector.load %arg11[%c0_43, %c0_44, %c0_45] : memref<4x8x1xf32, #tpu.memory_space<vmem>>, vector<4x8x1xf32>
      tpu.vector_store %arg11[%c0_43, %c0_44, %c0_45], %43 {strides = array<i32>} : memref<4x8x1xf32, #tpu.memory_space<vmem>>, vector<4x8x1xf32>,
      %cst_46 = arith.constant 0.000000e+00 : f32
      %45 = vector.broadcast %cst_46 : f32 to vector<4x8x8xf32>
      %c0_47 = arith.constant 0 : index
      %c0_48 = arith.constant 0 : index
      %c0_49 = arith.constant 0 : index
      %46 = vector.load %arg12[%c0_47, %c0_48, %c0_49] : memref<4x8x8xf32, #tpu.memory_space<vmem>>, vector<4x8x8xf32>
      tpu.vector_store %arg12[%c0_47, %c0_48, %c0_49], %45 {strides = array<i32>} : memref<4x8x8xf32, #tpu.memory_space<vmem>>, vector<4x8x8xf32>,
    } else {
    }
    %c0 = arith.constant 0 : index
    %c0_1 = arith.constant 0 : index
    %c0_2 = arith.constant 0 : index
    %c0_3 = arith.constant 0 : index
    %3 = vector.load %arg3[%c0, %c0_1, %c0_2, %c0_3] : memref<1x4x8x8xbf16, #tpu.memory_space<vmem>>, vector<1x4x8x8xbf16>
    %4 = vector.shape_cast %3 : vector<1x4x8x8xbf16> to vector<4x8x8xbf16>
    %c0_4 = arith.constant 0 : index
    %c0_5 = arith.constant 0 : index
    %c0_6 = arith.constant 0 : index
    %c0_7 = arith.constant 0 : index
    %5 = vector.load %arg4[%c0_4, %c0_5, %c0_6, %c0_7] : memref<1x4x8x8xbf16, #tpu.memory_space<vmem>>, vector<1x4x8x8xbf16>
    %6 = vector.shape_cast %5 : vector<1x4x8x8xbf16> to vector<4x8x8xbf16>
    %c0_8 = arith.constant 0 : index
    %c0_9 = arith.constant 0 : index
    %c0_10 = arith.constant 0 : index
    %c0_11 = arith.constant 0 : index
    %7 = vector.load %arg5[%c0_8, %c0_9, %c0_10, %c0_11] : memref<1x4x8x8xbf16, #tpu.memory_space<vmem>>, vector<1x4x8x8xbf16>
    %8 = vector.shape_cast %7 : vector<1x4x8x8xbf16> to vector<4x8x8xbf16>
    %c0_12 = arith.constant 0 : index
    %c0_13 = arith.constant 0 : index
    %c0_14 = arith.constant 0 : index
    %9 = vector.load %arg6[%c0_12, %c0_13, %c0_14] : memref<1x1x8xf32, #tpu.memory_space<vmem>>, vector<1x1x8xf32>
    %10 = vector.shape_cast %9 : vector<1x1x8xf32> to vector<1x8xf32>
    %cst = arith.constant dense<0.000000e+00> : vector<4x8x8xf32>
    %11 = tpu.matmul %4, %6, %cst {dimension_numbers = #tpu.dot_dimension_numbers<[2], [2], [1], [1], [0, 0, 0, 1, 1, 1], [0], [0]>} : vector<4x8x8xbf16>, vector<4x8x8xbf16>, vector<4x8x8xf32> -> vector<4x8x8xf32>
    %12 = vector.shape_cast %10 : vector<1x8xf32> to vector<1x1x8xf32>
    %13 = vector.broadcast %12 : vector<1x1x8xf32> to vector<4x8x8xf32>
    %14 = arith.addf %11, %13 : vector<4x8x8xf32>
    %c0_15 = arith.constant 0 : index
    %c0_16 = arith.constant 0 : index
    %c0_17 = arith.constant 0 : index
    %15 = vector.load %arg10[%c0_15, %c0_16, %c0_17] : memref<4x8x1xf32, #tpu.memory_space<vmem>>, vector<4x8x1xf32>
    %cst_18 = arith.constant dense<0xFF800000> : vector<4x8xf32>
    %16 = vector.multi_reduction <maximumf>, %14, %cst_18 [2] : vector<4x8x8xf32> to vector<4x8xf32>
    %17 = vector.shape_cast %16 : vector<4x8xf32> to vector<4x8x1xf32>
    %18 = arith.maximumf %15, %17 : vector<4x8x1xf32>
    %19 = arith.subf %15, %18 : vector<4x8x1xf32>
    %20 = math.exp %19 : vector<4x8x1xf32>
    %21 = vector.broadcast %18 : vector<4x8x1xf32> to vector<4x8x8xf32>
    %22 = arith.subf %14, %21 : vector<4x8x8xf32>
    %23 = math.exp %22 : vector<4x8x8xf32>
    %c0_19 = arith.constant 0 : index
    %c0_20 = arith.constant 0 : index
    %c0_21 = arith.constant 0 : index
    %24 = vector.load %arg11[%c0_19, %c0_20, %c0_21] : memref<4x8x1xf32, #tpu.memory_space<vmem>>, vector<4x8x1xf32>
    %25 = arith.mulf %20, %24 : vector<4x8x1xf32>
    %cst_22 = arith.constant dense<0.000000e+00> : vector<4x8xf32>
    %26 = vector.multi_reduction <add>, %23, %cst_22 [2] : vector<4x8x8xf32> to vector<4x8xf32>
    %27 = vector.shape_cast %26 : vector<4x8xf32> to vector<4x8x1xf32>
    %28 = arith.addf %25, %27 : vector<4x8x1xf32>
    %c0_23 = arith.constant 0 : index
    %c0_24 = arith.constant 0 : index
    %c0_25 = arith.constant 0 : index
    %29 = vector.load %arg11[%c0_23, %c0_24, %c0_25] : memref<4x8x1xf32, #tpu.memory_space<vmem>>, vector<4x8x1xf32>
    tpu.vector_store %arg11[%c0_23, %c0_24, %c0_25], %28 {strides = array<i32>} : memref<4x8x1xf32, #tpu.memory_space<vmem>>, vector<4x8x1xf32>,
    %30 = arith.truncf %23 : vector<4x8x8xf32> to vector<4x8x8xbf16>
    %cst_26 = arith.constant dense<0.000000e+00> : vector<4x8x8xf32>
    %31 = tpu.matmul %30, %8, %cst_26 {dimension_numbers = #tpu.dot_dimension_numbers<[2], [1], [1], [2], [0, 0, 0, 1, 1, 2], [0], [0]>} : vector<4x8x8xbf16>, vector<4x8x8xbf16>, vector<4x8x8xf32> -> vector<4x8x8xf32>
    %c0_27 = arith.constant 0 : index
    %c0_28 = arith.constant 0 : index
    %c0_29 = arith.constant 0 : index
    %32 = vector.load %arg12[%c0_27, %c0_28, %c0_29] : memref<4x8x8xf32, #tpu.memory_space<vmem>>, vector<4x8x8xf32>
    %33 = vector.broadcast %20 : vector<4x8x1xf32> to vector<4x8x8xf32>
    %34 = arith.mulf %33, %32 : vector<4x8x8xf32>
    %35 = arith.addf %34, %31 : vector<4x8x8xf32>
    %c0_30 = arith.constant 0 : index
    %c0_31 = arith.constant 0 : index
    %c0_32 = arith.constant 0 : index
    %36 = vector.load %arg12[%c0_30, %c0_31, %c0_32] : memref<4x8x8xf32, #tpu.memory_space<vmem>>, vector<4x8x8xf32>
    tpu.vector_store %arg12[%c0_30, %c0_31, %c0_32], %35 {strides = array<i32>} : memref<4x8x8xf32, #tpu.memory_space<vmem>>, vector<4x8x8xf32>,
    %c0_33 = arith.constant 0 : index
    %c0_34 = arith.constant 0 : index
    %c0_35 = arith.constant 0 : index
    %37 = vector.load %arg10[%c0_33, %c0_34, %c0_35] : memref<4x8x1xf32, #tpu.memory_space<vmem>>, vector<4x8x1xf32>
    tpu.vector_store %arg10[%c0_33, %c0_34, %c0_35], %18 {strides = array<i32>} : memref<4x8x1xf32, #tpu.memory_space<vmem>>, vector<4x8x1xf32>,
    %c0_i32_36 = arith.constant 0 : i32
    %38 = arith.cmpi eq, %arg2, %c0_i32_36 : i32
    %39 = arith.extui %38 : i1 to i32
    %c0_i32_37 = arith.constant 0 : i32
    %40 = arith.cmpi ne, %39, %c0_i32_37 : i32
    scf.if %40 {
      %c0_38 = arith.constant 0 : index
      %c0_39 = arith.constant 0 : index
      %c0_40 = arith.constant 0 : index
      %41 = vector.load %arg11[%c0_38, %c0_39, %c0_40] : memref<4x8x1xf32, #tpu.memory_space<vmem>>, vector<4x8x1xf32>
      %42 = tpu.reciprocal %41 {approx = true} : vector<4x8x1xf32> -> vector<4x8x1xf32>
      %c0_41 = arith.constant 0 : index
      %c0_42 = arith.constant 0 : index
      %c0_43 = arith.constant 0 : index
      %43 = vector.load %arg12[%c0_41, %c0_42, %c0_43] : memref<4x8x8xf32, #tpu.memory_space<vmem>>, vector<4x8x8xf32>
      %44 = vector.broadcast %42 : vector<4x8x1xf32> to vector<4x8x8xf32>
      %45 = arith.mulf %43, %44 : vector<4x8x8xf32>
      %46 = arith.truncf %45 : vector<4x8x8xf32> to vector<4x8x8xbf16>
      %c0_44 = arith.constant 0 : index
      %c0_45 = arith.constant 0 : index
      %47 = vector.load %arg8[%c0_44, %c0_45] : memref<1x32xf32, #tpu.memory_space<vmem>>, vector<1x32xf32>
      %48 = vector.extract_strided_slice %46 {offsets = [0, 0, 0], sizes = [1, 8, 8], strides = [1, 1, 1]} : vector<4x8x8xbf16> to vector<1x8x8xbf16>
      %49 = vector.shape_cast %48 : vector<1x8x8xbf16> to vector<8x8xbf16>
      %c0_46 = arith.constant 0 : index
      %c0_47 = arith.constant 0 : index
      %c0_48 = arith.constant 0 : index
      %50 = vector.load %arg7[%c0_46, %c0_47, %c0_48] : memref<4x8x32xbf16, #tpu.memory_space<vmem>>, vector<1x8x32xbf16>
      %51 = vector.shape_cast %50 : vector<1x8x32xbf16> to vector<8x32xbf16>
      %cst_49 = arith.constant dense<0.000000e+00> : vector<8x32xf32>
      %52 = tpu.matmul %49, %51, %cst_49 {dimension_numbers = #tpu.dot_dimension_numbers<[1], [0], [0], [1], [0, 0, 1, 1], [], []>} : vector<8x8xbf16>, vector<8x32xbf16>, vector<8x32xf32> -> vector<8x32xf32>
      %53 = vector.broadcast %47 : vector<1x32xf32> to vector<8x32xf32>
      %54 = arith.addf %53, %52 : vector<8x32xf32>
      %55 = vector.extract_strided_slice %46 {offsets = [1, 0, 0], sizes = [1, 8, 8], strides = [1, 1, 1]} : vector<4x8x8xbf16> to vector<1x8x8xbf16>
      %56 = vector.shape_cast %55 : vector<1x8x8xbf16> to vector<8x8xbf16>
      %c1 = arith.constant 1 : index
      %c0_50 = arith.constant 0 : index
      %c0_51 = arith.constant 0 : index
      %57 = vector.load %arg7[%c1, %c0_50, %c0_51] : memref<4x8x32xbf16, #tpu.memory_space<vmem>>, vector<1x8x32xbf16>
      %58 = vector.shape_cast %57 : vector<1x8x32xbf16> to vector<8x32xbf16>
      %cst_52 = arith.constant dense<0.000000e+00> : vector<8x32xf32>
      %59 = tpu.matmul %56, %58, %cst_52 {dimension_numbers = #tpu.dot_dimension_numbers<[1], [0], [0], [1], [0, 0, 1, 1], [], []>} : vector<8x8xbf16>, vector<8x32xbf16>, vector<8x32xf32> -> vector<8x32xf32>
      %60 = arith.addf %54, %59 : vector<8x32xf32>
      %61 = vector.extract_strided_slice %46 {offsets = [2, 0, 0], sizes = [1, 8, 8], strides = [1, 1, 1]} : vector<4x8x8xbf16> to vector<1x8x8xbf16>
      %62 = vector.shape_cast %61 : vector<1x8x8xbf16> to vector<8x8xbf16>
      %c2 = arith.constant 2 : index
      %c0_53 = arith.constant 0 : index
      %c0_54 = arith.constant 0 : index
      %63 = vector.load %arg7[%c2, %c0_53, %c0_54] : memref<4x8x32xbf16, #tpu.memory_space<vmem>>, vector<1x8x32xbf16>
      %64 = vector.shape_cast %63 : vector<1x8x32xbf16> to vector<8x32xbf16>
      %cst_55 = arith.constant dense<0.000000e+00> : vector<8x32xf32>
      %65 = tpu.matmul %62, %64, %cst_55 {dimension_numbers = #tpu.dot_dimension_numbers<[1], [0], [0], [1], [0, 0, 1, 1], [], []>} : vector<8x8xbf16>, vector<8x32xbf16>, vector<8x32xf32> -> vector<8x32xf32>
      %66 = arith.addf %60, %65 : vector<8x32xf32>
      %67 = vector.extract_strided_slice %46 {offsets = [3, 0, 0], sizes = [1, 8, 8], strides = [1, 1, 1]} : vector<4x8x8xbf16> to vector<1x8x8xbf16>
      %68 = vector.shape_cast %67 : vector<1x8x8xbf16> to vector<8x8xbf16>
      %c3 = arith.constant 3 : index
      %c0_56 = arith.constant 0 : index
      %c0_57 = arith.constant 0 : index
      %69 = vector.load %arg7[%c3, %c0_56, %c0_57] : memref<4x8x32xbf16, #tpu.memory_space<vmem>>, vector<1x8x32xbf16>
      %70 = vector.shape_cast %69 : vector<1x8x32xbf16> to vector<8x32xbf16>
      %cst_58 = arith.constant dense<0.000000e+00> : vector<8x32xf32>
      %71 = tpu.matmul %68, %70, %cst_58 {dimension_numbers = #tpu.dot_dimension_numbers<[1], [0], [0], [1], [0, 0, 1, 1], [], []>} : vector<8x8xbf16>, vector<8x32xbf16>, vector<8x32xf32> -> vector<8x32xf32>
      %72 = arith.addf %66, %71 : vector<8x32xf32>
      %c0_59 = arith.constant 0 : index
      %c0_60 = arith.constant 0 : index
      %c0_61 = arith.constant 0 : index
      %73 = vector.load %arg9[%c0_59, %c0_60, %c0_61] : memref<1x8x32xf32, #tpu.memory_space<vmem>>, vector<1x8x32xf32>
      %74 = vector.shape_cast %73 : vector<1x8x32xf32> to vector<8x32xf32>
      %75 = vector.shape_cast %72 : vector<8x32xf32> to vector<1x8x32xf32>
      tpu.vector_store %arg9[%c0_59, %c0_60, %c0_61], %75 {strides = array<i32>} : memref<1x8x32xf32, #tpu.memory_space<vmem>>, vector<1x8x32xf32>,
    } else {
    }
    return
  }
  func.func @transform_0(%arg0: i32, %arg1: i32, %arg2: i32) -> (i32, i32, i32, i32) {
    %c0_i32 = arith.constant 0 : i32
    %c0_i32_0 = arith.constant 0 : i32
    %c0_i32_1 = arith.constant 0 : i32
    return %arg0, %c0_i32, %arg1, %c0_i32_0 : i32, i32, i32, i32
  }
  func.func @transform_1(%arg0: i32, %arg1: i32, %arg2: i32) -> (i32, i32, i32, i32) {
    %c0_i32 = arith.constant 0 : i32
    %c0_i32_0 = arith.constant 0 : i32
    %c0_i32_1 = arith.constant 0 : i32
    return %arg0, %c0_i32, %arg2, %c0_i32_0 : i32, i32, i32, i32
  }
  func.func @transform_2(%arg0: i32, %arg1: i32, %arg2: i32) -> (i32, i32, i32, i32) {
    %c0_i32 = arith.constant 0 : i32
    %c0_i32_0 = arith.constant 0 : i32
    %c0_i32_1 = arith.constant 0 : i32
    return %arg0, %c0_i32, %arg2, %c0_i32_0 : i32, i32, i32, i32
  }
  func.func @transform_3(%arg0: i32, %arg1: i32, %arg2: i32) -> (i32, i32, i32) {
    %c0_i32 = arith.constant 0 : i32
    %c0_i32_0 = arith.constant 0 : i32
    return %arg0, %c0_i32, %arg2 : i32, i32, i32
  }
  func.func @transform_4(%arg0: i32, %arg1: i32, %arg2: i32) -> (i32, i32, i32) {
    %c0_i32 = arith.constant 0 : i32
    %c0_i32_0 = arith.constant 0 : i32
    %c0_i32_1 = arith.constant 0 : i32
    %c0_i32_2 = arith.constant 0 : i32
    return %c0_i32, %c0_i32_0, %c0_i32_1 : i32, i32, i32
  }
  func.func @transform_5(%arg0: i32, %arg1: i32, %arg2: i32) -> (i32, i32) {
    %c0_i32 = arith.constant 0 : i32
    %c0_i32_0 = arith.constant 0 : i32
    %c0_i32_1 = arith.constant 0 : i32
    return %c0_i32, %c0_i32_0 : i32, i32
  }
  func.func @transform_6(%arg0: i32, %arg1: i32, %arg2: i32) -> (i32, i32, i32) {
    %c0_i32 = arith.constant 0 : i32
    %c0_i32_0 = arith.constant 0 : i32
    return %arg0, %arg1, %c0_i32 : i32, i32, i32
  }
}

</mosaic_0001>

<bundles_post_ra>
// kernel: tpu_custom_call.1
= control target key start
LH: loop header
LB: loop body
LE: loop exit
PB: predicated region body
PF: predicated region fallthrough
CT: control target
= control target key end

     0   :  { %s1784_s0 = inlined_call_operand.hbm [shape: bf16[2,4,8,8], index: 0, kind: input, shape index: {}]   ;;  %s1785_s1 = inlined_call_operand.hbm [shape: bf16[2,4,8,8], index: 1, kind: input, shape index: {}]   ;;  %s1786_s2 = inlined_call_operand.hbm [shape: bf16[2,4,8,8], index: 2, kind: input, shape index: {}]   ;;  %s1787_s3 = inlined_call_operand.vmem [shape: f32[2,1,8], index: 3, kind: input, shape index: {}]   ;;  %s1788_s4 = inlined_call_operand.hbm [shape: bf16[4,8,32], index: 4, kind: input, shape index: {}]   ;;  %s1789_s5 = inlined_call_operand.vmem [shape: f32[1,32], index: 5, kind: input, shape index: {}]   ;;  %s1790_s6 = inlined_call_operand.hbm [shape: f32[2,8,32], index: 6, kind: output, shape index: {}]  }
   0x1   :  { %1800 = sst [smem:[#allocation22_spill]] %s1784_s0 }
   0x2   :  { %1801 = sst [smem:[#allocation23_spill]] %s1785_s1 }
   0x3   :  { %1802 = sst [smem:[#allocation24_spill]] %s1788_s4 }
   0x4   :  { %11 = vsyncpa [#allocation6], 0 }
   0x5   :  { %13 = vsyncpa [#allocation6 + $0x1], 0 }
   0x6   :  { %14 = vsyncpa [#allocation9], 0 }
   0x7   :  { %16 = vsyncpa [#allocation9 + $0x1], 0 }
   0x8   :  { %17 = vsyncpa [#allocation12], 0 }
   0x9   :  { %18 = vsyncpa [#allocation7], 0 }
   0xa   :  { %20 = vsyncpa [#allocation7 + $0x1], 0  ;;  %s1466_s21 = smov 0   ;;  %s1468_s22 = smov 0  }
   0xb   :  { %s1470_s23 = smov 0   ;;  %s1472_s24 = smov 0  }
   0xc   :  { %s1474_s25 = smov 0   ;;  %s1476_s26 = smov 0  }
   0xd LB: > { %1803 = sst [smem:[#allocation18_spill]] %s1419_s25  ;;  %s45_s27 = sadd.s32 1, %s1419_s25  ;;  %s1423_s26 = sphi %s1476_s26, %s26_s26   ;;  %s1419_s25 = sphi %s1474_s25, %s1821_s25   ;;  %s1415_s24 = sphi %s1472_s24, %s1820_s24   ;;  %s1411_s23 = sphi %s1470_s23, %s1824_s23   ;;  %s1407_s22 = sphi %s1468_s22, %s1823_s22   ;;  %s1403_s21 = sphi %s1466_s21, %s1822_s21  }
   0xe   : > { %1804 = sst [smem:[#allocation19_spill]] %s1423_s26  ;;  %s54_s28 = sadd.s32 1, %s1411_s23 }
   0xf   : > { %p47_p0 = scmp.ge.s32.totalorder %s45_s27, 2  ;;  %p61_p1 = scmp.ne.s32.totalorder %s1411_s23, %s1407_s22 }
  0x10   : > { %p62_p2 = scmp.eq.s32.totalorder %s1423_s26, 0  ;;  %p1061_p4 = scmp.ge.s32.totalorder %s1423_s26, 2 }
  0x11   : > { %s1826_s27 = smov (%p47_p0, %s45_s27), 0  ;;  %p1127_p6 = scmp.lt.s32.totalorder %s1423_s26, 2 }
  0x12   : > { %1805 = sst [smem:[#allocation20_spill]] %s1826_s27  ;;  %p63_p3 = por %p62_p2, %p61_p1 }
  0x13   : > { %s49_s29 = ssub.s32 %s1419_s25, %s1826_s27  ;;  %s1791_s30 = sand.u32 1, %s1411_s23  }
  0x14   : > { %p52_p5 = scmp.eq.s32.totalorder %s49_s29, 0  ;;  %s1512_s7 = sshll.u32 %s1419_s25, 4 }
  0x15   : > { %s1519_s9 = sshll.u32 %s1791_s30, 4  ;;  %p1521_p7 = pnand %p1127_p6, %p63_p3 }
  0x16   : > { %s1515_s8 = scalar_select %p52_p5, %s1411_s23, %s54_s28  }
  0x17   : > { %s285_s11 = sand.u32 1, %s1423_s26   ;;  %s1808_s1 = sld [smem:[#allocation23_spill]] }
  0x18   : > { %1806 = sst [smem:[#allocation21_spill]] %s1515_s8  ;;  %s289_s15 = scalar_lea.vmem [#allocation8], %s1519_s9 }
  0x19   : > { %s298_s16 = sshll.u32 %s289_s15, 4  ;;  %s1531_s18 = scalar_lea.sflag [#allocation9], %s285_s11  ;;  %s299_s16 = int_to_ptr.vmem [resolvable:$true] %s298_s16 }
  0x1a   : > { %s1792_s19 = smov 64   ;;  %s1794_s20 = smov 4  }
  0x1b   : > { %s1540_s28 = sadd.s32 4294967295, %s1423_s26   ;;  %s1058_s29 = sadd.s32 4294967294, %s1423_s26  }
  0x1c   : > { %p67_p8 = scmp.ne.s32.totalorder %s1407_s22, %s1403_s21  ;;  %p68_p9 = scmp.eq.s32.totalorder %s1540_s28, 0 }
  0x1d   : > { %s295_s14 = scalar_lea.hbm %s1808_s1, %s1512_s7  ;;  %p219_p10 = scmp.eq.s32.totalorder %s1540_s28, 1 }
  0x1e   : > { %s296_s17 = sshll.u32 %s295_s14, 4  ;;  %p225_p11 = scmp.eq.s32.totalorder %s1058_s29, 1  ;;  %s297_s17 = int_to_ptr.hbm [resolvable:$true] %s296_s17 }
  0x1f   : > { %1118 = dma.hbm_to_vmem [thread:$0]  (!%p1521_p7), %s297_s17, 256, %s299_s16, %s1531_s18, %s1792_s19, %s1792_s19, %s1794_s20  }
  0x20   : > { %p1059_p12 = scmp.ge.s32.totalorder %s1423_s26, 1  ;;  %p1550_p13 = por %p68_p9, %p67_p8 }
  0x21   : > { %p1557_p0 = por %p219_p10, %p61_p1  ;;  %p1561_p2 = por %p225_p11, %p67_p8 }
  0x22   : > { %p232_p3 = scmp.lt.s32.totalorder %s1423_s26, 3  ;;  %s1812_s4 = sld [smem:[#allocation24_spill]] }
  0x23   : > { %s1427_s29 = smov [#allocation11]   ;;  %s1814_s0 = sld [smem:[#allocation22_spill]] }
  0x24   : > { %p1569_p5 = pnand %p1059_p12, %p232_p3  ;;  %s245_s30 = sshll.u32 %s1427_s29, 4  ;;  %s246_s30 = int_to_ptr.vmem [resolvable:$true] %s245_s30 }
  0x25   : > { %s266_s1 = scalar_lea.vmem [#allocation5], %s1519_s9  ;;  %s1815_s27 = smov 4  }
  0x26   : > { %p1108_p1 = pneg %p1569_p5  ;;  %s1816_s25 = smov 64  }
  0x27   : > { %s1817_s8 = sand.u32 1, %s1411_s23  }
  0x28   : > { %s243_s16 = sshll.u32 %s1812_s4, 4  ;;  %p1109_p6 = pnand %p1108_p1, %p68_p9  ;;  %s244_s16 = int_to_ptr.hbm [resolvable:$true] %s243_s16 }
  0x29   : > { %s272_s15 = scalar_lea.hbm %s1814_s0, %s1512_s7  ;;  %s275_s4 = sshll.u32 %s266_s1, 4  ;;  %s276_s4 = int_to_ptr.vmem [resolvable:$true] %s275_s4 }
  0x2a   : > { %s273_s20 = sshll.u32 %s272_s15, 4  ;;  %s263_s29 = scalar_lea.sflag [#allocation6], %s1817_s8  ;;  %s274_s20 = int_to_ptr.hbm [resolvable:$true] %s273_s20 }
  0x2b   : > { %1111 = dma.hbm_to_vmem [thread:$0]  (!%p1109_p6), %s244_s16, 256, %s246_s30, [#allocation12], %s1816_s25, %s1816_s25, %s1815_s27  }
  0x2c   : > { %1115 = dma.hbm_to_vmem [thread:$0]  (!%p1521_p7), %s274_s20, 256, %s276_s4, %s263_s29, %s1816_s25, %s1816_s25, %s1815_s27  }
  0x2d   : > { %s318_s0 = scalar_lea.hbm %s1786_s2, %s1512_s7  ;;  %s312_s15 = scalar_lea.vmem [#allocation10], %s1519_s9 }
  0x2e   : > { %s321_s26 = sshll.u32 %s312_s15, 4  ;;  %s319_s1 = sshll.u32 %s318_s0, 4  ;;  %s322_s26 = int_to_ptr.vmem [resolvable:$true] %s321_s26  ;;  %s320_s1 = int_to_ptr.hbm [resolvable:$true] %s319_s1 }
  0x2f   : > { %1121 = dma.hbm_to_vmem [thread:$0]  (!%p1521_p7), %s320_s1, 256, %s322_s26, %s1531_s18, %s1816_s25, %s1816_s25, %s1815_s27  }
  0x30   : > { %342 = sbr.rel (%p1569_p5) target bundleno = 832 (0x340), region = 44  ;;  %s1606_s4 = sand.u32 (!%p1569_p5), 1, %s1407_s22  }
  0x31   : > { %s1072_s30 = sshll.u32 (!%p1569_p5), %s1606_s4, 4  ;;  %s345_s7 = scalar_lea.sflag (!%p1569_p5), [#allocation6], %s1606_s4 }
  0x32   : > { %s348_s8 = scalar_lea.vmem (!%p1569_p5), [#allocation5], %s1072_s30 }
  0x35   : > { %1386 = dma.done.wait (%p1550_p13), %s345_s7, 256  }
  0x36   : > { %1388 = vsyncadd (%p1550_p13), %s345_s7, 4294967040  ;;  %s354_s0 = sand.u32 1, %s1540_s28   ;;  %s358_s26 = scalar_lea.vmem [#allocation8], %s1072_s30 }
  0x37   : > { %s355_s25 = scalar_lea.sflag [#allocation9], %s354_s0 }
  0x38   : > { %1390 = dma.done.wait (%p1550_p13), %s355_s25, 512  }
  0x39   : > { %1392 = vsyncadd (%p1550_p13), %s355_s25, 4294966784  ;;  %s1619_s27 = scalar_lea.vmem [#allocation10], %s1072_s30 }
  0x3a   : > { %1394 = dma.done.wait (%p68_p9), [#allocation12], 256  }
  0x3b   : > { %1396 = vsyncadd (%p68_p9), [#allocation12], 4294967040  ;;  %p419_p7 = scmp.lt.s32.totalorder %s1415_s24, 1  ;;  %vm439_vm0 = vcmask 64512   ;;  %v448_v0 = vld [vmem:[%s358_s26] sm:$0xf] }
  0x3c   : > { %v450_v1 = vld [vmem:[%s358_s26 + $0x8] sm:$0xf]  ;;  %v465_v2 = vsel %vm439_vm0, %v448_v0, 0  ;;  %v449_v4 = vld [vmem:[%s358_s26 + $0x4] sm:$0xf]  ;;  %vm430_vm1 = vcmask 7168  }
  0x3d   : > { %s420_s9 = scalar_select %p419_p7, %s1415_s24, 1  ;;  %v503_v3 = vsel %vm439_vm0, %v450_v1, 0  ;;  %474 = vmatpush.bf16.xpose.msra.mxu0 %v465_v2  ;;  %v484_v5 = vsel %vm439_vm0, %v449_v4, 0  ;;  %v451_v6 = vld [vmem:[%s358_s26 + $0xc] sm:$0xf]  ;;  %v1428_v12 = vmov -inf  }
  0x3e   : > { %512 = vmatpush.bf16.xpose.msra.mxu2 %v503_v3  ;;  %493 = vmatpush.bf16.xpose.msra.mxu1 %v484_v5  ;;  %v522_v7 = vsel %vm439_vm0, %v451_v6, 0  ;;  %v444_v8 = vld [vmem:[%s348_s8] sm:$0xf]  ;;  %v446_v9 = vld [vmem:[%s348_s8 + $0x8] sm:$0xf]  ;;  %431 = vst.msk [vmem:[#allocation2] sm:$0xff] %vm430_vm1, %v1428_v12 }
  0x3f   : > { %s424_s20 = scalar_lea.vmem %s1787_s3, %s420_s9  ;;  %531 = vmatpush.bf16.xpose.msra.mxu3 %v522_v7  ;;  %v445_v10 = vld [vmem:[%s348_s8 + $0x4] sm:$0xf]  ;;  %v447_v11 = vld [vmem:[%s348_s8 + $0xc] sm:$0xf]  ;;  %432 = vst.msk [vmem:[#allocation2 + $0x8] sm:$0xff] %vm430_vm1, %v1428_v12  ;;  %v1429_v30 = vmov 0  }
  0x40   : > { %433 = vst.msk [vmem:[#allocation2 + $0x10] sm:$0xff] %vm430_vm1, %v1428_v12  ;;  %v1187_v13 = vld [vmem:[%s424_s20] ss:$0 sm:$0xff]  ;;  %1185 = vset.pattern.permute.xlu0 %v1429_v30  ;;  %1184 = vset.pattern.permute.xlu2 %v1429_v30  ;;  %v1430_v31 = vmov 0.0   ;;  %v454_v48 = vld [vmem:[%s1619_s27 + $0x8] sm:$0xf] }
  0x41   : > { %434 = vst.msk [vmem:[#allocation2 + $0x18] sm:$0xff] %vm430_vm1, %v1428_v12  ;;  %1186 = vset.pattern.permute.xlu1 %v1429_v30  ;;  %vm637_vm2 = vcmask 1043456   ;;  %v455_v50 = vld [vmem:[%s1619_s27 + $0xc] sm:$0xf]  ;;  %v452_v52 = vld [vmem:[%s1619_s27] sm:$0xf] }
  0x42   : > { %437 = vst.msk [vmem:[#allocation3 + $0x10] sm:$0xff] %vm430_vm1, %v1430_v31  ;;  %v677_v49 = vsel %vm637_vm2, %v454_v48, 0  ;;  %v696_v51 = vsel %vm637_vm2, %v455_v50, 0  ;;  %v639_v53 = vsel %vm637_vm2, %v452_v52, 0  ;;  %v453_v55 = vld [vmem:[%s1619_s27 + $0x4] sm:$0xf] }
  0x43   : > { %435 = vst.msk [vmem:[#allocation3] sm:$0xff] %vm430_vm1, %v1430_v31  ;;  %v658_v57 = vsel %vm637_vm2, %v453_v55, 0  ;;  %s1076_s16 = sshll.u32 %s1606_s4, 3  ;;  %s1090_s17 = sshll.u32 %s1415_s24, 3  ;;  %vm885_vm3 = vcmask 261120  }
  0x44   : > { %1077 = vmatmul.msk.bf16.vlgmr.msra.gmra.mxu0 %vm439_vm0, %v444_v8  ;;  %436 = vst.msk [vmem:[#allocation3 + $0x8] sm:$0xff] %vm430_vm1, %v1430_v31  ;;  %s899_s14 = scalar_lea.hbm %s1790_s6, %s1090_s17  ;;  %s418_s15 = scalar_lea.vmem [#allocation13], %s1076_s16 }
  0x45   : > { %1079 = vmatmul.msk.bf16.vlgmr.msra.gmra.mxu2 %vm439_vm0, %v446_v9  ;;  %1078 = vmatmul.msk.bf16.vlgmr.msra.gmra.mxu1 %vm439_vm0, %v445_v10  ;;  %438 = vst.msk [vmem:[#allocation3 + $0x18] sm:$0xff] %vm430_vm1, %v1430_v31  ;;  %v1666_v32 = vld [vmem:[#allocation2] sm:$0xff]  ;;  %s901_s1 = sshll.u32 %s418_s15, 4  ;;  %s903_s30 = sshll.u32 %s899_s14, 4  ;;  %s902_s1 = int_to_ptr.vmem [resolvable:$true] %s901_s1  ;;  %s904_s30 = int_to_ptr.hbm [resolvable:$true] %s903_s30 }
  0x46   : > { %1080 = vmatmul.msk.bf16.vlgmr.msra.gmra.mxu3 %vm439_vm0, %v447_v11  ;;  %440 = vst.msk [vmem:[#allocation4] sm:$0xff] %vm439_vm0, %v1430_v31  ;;  %v1678_v38 = vld [vmem:[#allocation2 + $0x8] sm:$0xff]  ;;  %686 = vmatpush.bf16.msrb.mxu2 %v677_v49  ;;  %s888_s7 = scalar_lea.sflag [#allocation7], %s1606_s4  ;;  %s1347_s24 = sshra.s32 %s904_s30, 4  ;;  %s1348_s24 = int_to_ptr.hbm [resolvable:$true] %s1347_s24 }
  0x47   : > { %441 = vst.msk [vmem:[#allocation4 + $0x8] sm:$0xff] %vm439_vm0, %v1430_v31  ;;  %v1676_v36 = vld [vmem:[#allocation2 + $0x10] sm:$0xff]  ;;  %705 = vmatpush.bf16.msrb.mxu3 %v696_v51  ;;  %648 = vmatpush.bf16.msrb.mxu0 %v639_v53  ;;  %s1349_s8 = scalar_lea.hbm %s1348_s24, 8  ;;  %s1353_s26 = scalar_lea.hbm %s1790_s6, 16 }
  0x48   : > { %442 = vst.msk [vmem:[#allocation4 + $0x10] sm:$0xff] %vm439_vm0, %v1430_v31  ;;  %v540_v44 = vld [vmem:[#allocation2 + $0x18] sm:$0xff]  ;;  %667 = vmatpush.bf16.msrb.mxu1 %v658_v57  ;;  %p1350_p8 = scmp.ne.s32.totalorder %s1348_s24, %s1349_s8  ;;  %p1354_p11 = scmp.lt.s32.totalorder %s1348_s24, %s1790_s6 }
  0x49   : > { %443 = vst.msk [vmem:[#allocation4 + $0x18] sm:$0xff] %vm439_vm0, %v1430_v31  ;;  %p1355_p12 = scmp.lt.s32.totalorder %s1353_s26, %s1349_s8 }
  0x4a   : > { %p1351_p9 = pnand %p1350_p8, %p1557_p0 }
  0x4b   : > { %p1356_p13 = por %p1355_p12, %p1354_p11 }
  0x4c   : > { %p1352_p10 = pneg %p1351_p9 }
  0x4e   : > { %p1357_p3 = pnand %p1356_p13, %p1352_p10 }
  0x4f   : > { %v713_v51 = vld [vmem:[#allocation4 + $0x10] sm:$0xff] }
  0x50   : > { %v714_v49 = vld [vmem:[#allocation4 + $0x18] sm:$0xff] }
  0xc1   : > { %v476_v14 = vpop.f32.mrf.mxu0 }
  0xc2   : > { %v1642_v15 = vadd.f32 %v1187_v13, %v476_v14  ;;  %v495_v16 = vpop.f32.mrf.mxu1 }
  0xc3   : > { %v1646_v18 = vadd.f32 %v1187_v13, %v495_v16 }
  0xc4   : > { %v541_v17 = vsel %vm439_vm0, %v1642_v15, -inf }
  0xc5   : > { %542 = vmax.xlane.f32.xlu1 %v541_v17  ;;  %v544_v24 = vsel %vm439_vm0, %v1646_v18, -inf }
  0xc8   : > { %v514_v19 = vpop.f32.mrf.mxu2 }
  0xc9   : > { %v1648_v20 = vadd.f32 %v1187_v13, %v514_v19  ;;  %v478_v21 = vpop.f32.mrf.mxu0  ;;  %v533_v22 = vpop.f32.mrf.mxu3 }
  0xca   : > { %v497_v25 = vpop.f32.mrf.mxu1  ;;  %v1654_v26 = vadd.f32 %v1187_v13, %v533_v22 }
  0xcb   : > { %v547_v23 = vsel %vm439_vm0, %v1648_v20, -inf }
  0xcc   : > { %548 = vmax.xlane.f32.xlu0 %v547_v23  ;;  %v550_v28 = vsel %vm439_vm0, %v1654_v26, -inf }
  0xcd   : > { %545 = vmax.xlane.f32.xlu1 %v544_v24  ;;  %v603_v24 = vld [vmem:[#allocation3 + $0x10] sm:$0xff] }
  0xd0   : > { %v516_v27 = vpop.f32.mrf.mxu2 }
  0xd1   : > { %v535_v29 = vpop.f32.mrf.mxu3 }
  0xd4   : > { %551 = vmax.xlane.f32.xlu0 %v550_v28  ;;  %v604_v28 = vld [vmem:[#allocation3 + $0x18] sm:$0xff] }
 0x138   : > { %v543_v33 = vpop.xlane.xlu1 %542 }
 0x139   : > { %v1669_v34 = vmax.f32 %v1666_v32, %v543_v33  ;;  %v601_v33 = vld [vmem:[#allocation3] sm:$0xff] }
 0x13b   : > { %v557_v35 = vsub.f32 %v1666_v32, %v1669_v34  ;;  %747 = vst.msk [vmem:[#allocation2] sm:$0xff] %vm430_vm1, %v1669_v34  ;;  %571 = vperm.xlu0 %1185, %v1669_v34  }
 0x13d   : > { %v561_v19 = vmul.f32 1.442695, %v557_v35 }
 0x13f   : > { %v549_v37 = vpop.xlane.xlu0 %548 }
 0x140   : > { %v1681_v39 = vmax.f32 %v1676_v36, %v549_v37  ;;  %v546_v40 = vpop.xlane.xlu1 %545 }
 0x141   : > { %v1688_v42 = vmax.f32 %v1678_v38, %v546_v40  ;;  %v602_v40 = vld [vmem:[#allocation3 + $0x8] sm:$0xff] }
 0x142   : > { %v559_v41 = vsub.f32 %v1676_v36, %v1681_v39  ;;  %749 = vst.msk [vmem:[#allocation2 + $0x10] sm:$0xff] %vm430_vm1, %v1681_v39  ;;  %581 = vperm.xlu2 %1184, %v1681_v39  }
 0x143   : > { %v558_v43 = vsub.f32 %v1678_v38, %v1688_v42  ;;  %748 = vst.msk [vmem:[#allocation2 + $0x8] sm:$0xff] %vm430_vm1, %v1688_v42  ;;  %576 = vperm.xlu1 %1186, %v1688_v42  }
 0x145   : > { %v563_v21 = vmul.f32 1.442695, %v558_v43 }
 0x147   : > { %v552_v45 = vpop.xlane.xlu0 %551 }
 0x148   : > { %v556_v46 = vmax.f32 %v540_v44, %v552_v45 }
 0x14a   : > { %v560_v47 = vsub.f32 %v540_v44, %v556_v46  ;;  %750 = vst.msk [vmem:[#allocation2 + $0x18] sm:$0xff] %vm430_vm1, %v556_v46  ;;  %586 = vperm.xlu2 %1184, %v556_v46  }
 0x14c   : > { %v567_v13 = vmul.f32 1.442695, %v560_v47 }
 0x19c   : > { %v582_v54 = vpop.permute.xlu2 %581 }
 0x19d   : > { %v591_v56 = vsub.f32 %v1648_v20, %v582_v54 }
 0x19f   : > { %v597_v58 = vmul.f32 1.442695, %v591_v56 }
 0x1a1   : > { %1189 = vpow2.f32 %v597_v58 }
 0x1a4   : > { %v587_v59 = vpop.permute.xlu2 %586 }
 0x1a5   : > { %v592_v60 = vsub.f32 %v1654_v26, %v587_v59 }
 0x1a7   : > { %v1190_v61 = vpop.eup %1189  ;;  %v599_v62 = vmul.f32 1.442695, %v592_v60 }
 0x1a8   : > { %v615_v63 = vsel %vm439_vm0, %v1190_v61, 0.0  ;;  %v632_v0 = vpack.c.bf16 %v1190_v61, %v1190_v61 }
 0x1a9   : > { %1191 = vpow2.f32 %v599_v62  ;;  %616 = vadd.xlane.f32.xlu2 %v615_v63  ;;  %v711_v62 = vld [vmem:[#allocation4] sm:$0xff] }
 0x1aa   : > { %1083 = vmatmul.msk.bf16.vlgmr.msrb.gmra.mxu2 %vm439_vm0, %v632_v0 }
 0x1ad   : > { %v572_v1 = vpop.permute.xlu0 %571 }
 0x1ae   : > { %v589_v3 = vsub.f32 %v1642_v15, %v572_v1 }
 0x1af   : > { %v1192_v2 = vpop.eup %1191 }
 0x1b0   : > { %v618_v4 = vsel %vm439_vm0, %v1192_v2, 0.0  ;;  %v633_v5 = vpack.c.bf16 %v1192_v2, %v1192_v2  ;;  %v593_v6 = vmul.f32 1.442695, %v589_v3 }
 0x1b1   : > { %619 = vadd.xlane.f32.xlu1 %v618_v4  ;;  %v712_v4 = vld [vmem:[#allocation4 + $0x8] sm:$0xff] }
 0x1b2   : > { %1084 = vmatmul.msk.bf16.vlgmr.msrb.gmra.mxu3 %vm439_vm0, %v633_v5  ;;  %1193 = vpow2.f32 %v593_v6 }
 0x1b5   : > { %v577_v7 = vpop.permute.xlu1 %576 }
 0x1b6   : > { %v590_v8 = vsub.f32 %v1646_v18, %v577_v7  ;;  %v565_v18 = vmul.f32 1.442695, %v559_v41 }
 0x1b8   : > { %v1194_v9 = vpop.eup %1193  ;;  %v595_v10 = vmul.f32 1.442695, %v590_v8  ;;  %v864_v8 = vld [vmem:[#allocation11 + $0xc] sm:$0xf] }
 0x1b9   : > { %v609_v11 = vsel %vm439_vm0, %v1194_v9, 0.0  ;;  %v630_v12 = vpack.c.bf16 %v1194_v9, %v1194_v9  ;;  %v869_v9 = vsel %vm637_vm2, %v864_v8, 0 }
 0x1ba   : > { %1195 = vpow2.f32 %v595_v10  ;;  %610 = vadd.xlane.f32.xlu0 %v609_v11  ;;  %878 = vmatpush.bf16.msra.mxu3 %v869_v9  ;;  %v842_v10 = vld [vmem:[#allocation11 + $0x8] sm:$0xf] }
 0x1bb   : > { %1081 = vmatmul.msk.bf16.vlgmr.msrb.gmra.mxu0 %vm439_vm0, %v630_v12  ;;  %1197 = vpow2.f32 %v567_v13  ;;  %v847_v11 = vsel %vm637_vm2, %v842_v10, 0  ;;  %v820_v12 = vld [vmem:[#allocation11 + $0x4] sm:$0xf] }
 0x1bc   : > { %1199 = vpow2.f32 %v565_v18  ;;  %856 = vmatpush.bf16.msra.mxu2 %v847_v11  ;;  %v825_v13 = vsel %vm637_vm2, %v820_v12, 0 }
 0x1bd   : > { %1201 = vpow2.f32 %v561_v19  ;;  %834 = vmatpush.bf16.msra.mxu1 %v825_v13 }
 0x1be   : > { %1203 = vpow2.f32 %v563_v21 }
 0x1c0   : > { %v1196_v14 = vpop.eup %1195 }
 0x1c1   : > { %v612_v15 = vsel %vm439_vm0, %v1196_v14, 0.0  ;;  %v631_v16 = vpack.c.bf16 %v1196_v14, %v1196_v14  ;;  %v1198_v17 = vpop.eup %1197  ;;  %v795_v14 = vld [vmem:[#allocation11] sm:$0xf] }
 0x1c2   : > { %613 = vadd.xlane.f32.xlu2 %v612_v15  ;;  %v1200_v20 = vpop.eup %1199  ;;  %v608_v29 = vmul.f32 %v1198_v17, %v604_v28  ;;  %v800_v15 = vsel %vm637_vm2, %v795_v14, 0 }
 0x1c3   : > { %1082 = vmatmul.msk.bf16.vlgmr.msrb.gmra.mxu1 %vm439_vm0, %v631_v16  ;;  %v1202_v22 = vpop.eup %1201  ;;  %v607_v25 = vmul.f32 %v1200_v20, %v603_v24  ;;  %809 = vmatpush.bf16.msra.mxu0 %v800_v15 }
 0x1c4   : > { %v1204_v23 = vpop.eup %1203  ;;  %v605_v36 = vmul.f32 %v1202_v22, %v601_v33 }
 0x1c5   : > { %v606_v44 = vmul.f32 %v1204_v23, %v602_v40 }
 0x1ca   : > { %732 = vperm.xlu1 %1186, %v1198_v17  }
 0x1da   : > { %727 = vperm.xlu2 %1184, %v1200_v20  }
 0x1e2   : > { %717 = vperm.xlu2 %1184, %v1202_v22  }
 0x1ea   : > { %722 = vperm.xlu2 %1184, %v1204_v23  }
 0x21c   : > { %v617_v26 = vpop.xlane.xlu2 %616 }
 0x21d   : > { %v623_v27 = vadd.f32 %v617_v26, %v607_v25 }
 0x21f   : > { %628 = vst.msk [vmem:[#allocation3 + $0x10] sm:$0xff] %vm430_vm1, %v623_v27 }
 0x224   : > { %v620_v30 = vpop.xlane.xlu1 %619 }
 0x225   : > { %v624_v31 = vadd.f32 %v620_v30, %v608_v29 }
 0x226   : > { %v756_v32 = vld [vmem:[#allocation3 + $0x10] sm:$0xff] }
 0x227   : > { %629 = vst.msk [vmem:[#allocation3 + $0x18] sm:$0xff] %vm430_vm1, %v624_v31  ;;  %1205 = vrcp.f32 %v756_v32 }
 0x22d   : > { %v1206_v34 = vpop.eup %1205  ;;  %v688_v35 = vpop.f32.mrf.mxu2 }
 0x22e   : > { %778 = vperm.xlu0 %1185, %v1206_v34   ;;  %v611_v37 = vpop.xlane.xlu0 %610  ;;  %v757_v38 = vld [vmem:[#allocation3 + $0x18] sm:$0xff] }
 0x22f   : > { %v621_v39 = vadd.f32 %v611_v37, %v605_v36  ;;  %1207 = vrcp.f32 %v757_v38  ;;  %v1188_v38 = vld [vmem:[%s1789_s5] ss:$0 sm:$0xff] }
 0x231   : > { %626 = vst.msk [vmem:[#allocation3] sm:$0xff] %vm430_vm1, %v621_v39 }
 0x235   : > { %v1208_v41 = vpop.eup %1207  ;;  %v690_v42 = vpop.f32.mrf.mxu2 }
 0x236   : > { %v707_v43 = vpop.f32.mrf.mxu3  ;;  %v614_v45 = vpop.xlane.xlu2 %613  ;;  %783 = vperm.xlu2 %1184, %v1208_v41  }
 0x237   : > { %v622_v46 = vadd.f32 %v614_v45, %v606_v44 }
 0x238   : > { %v754_v47 = vld [vmem:[#allocation3] sm:$0xff]  ;;  %v650_v48 = vpop.f32.mrf.mxu0 }
 0x239   : > { %627 = vst.msk [vmem:[#allocation3 + $0x8] sm:$0xff] %vm430_vm1, %v622_v46  ;;  %1209 = vrcp.f32 %v754_v47 }
 0x23c   : > { %v733_v50 = vpop.permute.xlu1 %732 }
 0x23d   : > { %v738_v52 = vmul.f32 %v733_v50, %v714_v49 }
 0x23e   : > { %v709_v53 = vpop.f32.mrf.mxu3  ;;  %v728_v54 = vpop.permute.xlu2 %727 }
 0x23f   : > { %v1210_v55 = vpop.eup %1209  ;;  %v742_v56 = vadd.f32 %v738_v52, %v707_v43  ;;  %v737_v57 = vmul.f32 %v728_v54, %v713_v51 }
 0x240   : > { %768 = vperm.xlu1 %1186, %v1210_v55   ;;  %v755_v58 = vld [vmem:[#allocation3 + $0x8] sm:$0xff]  ;;  %v652_v60 = vpop.f32.mrf.mxu0  ;;  %v669_v61 = vpop.f32.mrf.mxu1 }
 0x241   : > { %746 = vst.msk [vmem:[#allocation4 + $0x18] sm:$0xff] %vm439_vm0, %v742_v56  ;;  %v741_v59 = vadd.f32 %v737_v57, %v688_v35  ;;  %1211 = vrcp.f32 %v755_v58 }
 0x243   : > { %745 = vst.msk [vmem:[#allocation4 + $0x10] sm:$0xff] %vm439_vm0, %v741_v59 }
 0x246   : > { %v718_v63 = vpop.permute.xlu2 %717 }
 0x247   : > { %v1212_v0 = vpop.eup %1211  ;;  %v735_v1 = vmul.f32 %v718_v63, %v711_v62 }
 0x248   : > { %773 = vperm.xlu2 %1184, %v1212_v0   ;;  %v671_v3 = vpop.f32.mrf.mxu1  ;;  %v765_v16 = vld [vmem:[#allocation4 + $0x18] sm:$0xff] }
 0x249   : > { %v739_v2 = vadd.f32 %v735_v1, %v650_v48 }
 0x24a   : > { %v764_v20 = vld [vmem:[#allocation4 + $0x10] sm:$0xff] }
 0x24b   : > { %743 = vst.msk [vmem:[#allocation4] sm:$0xff] %vm439_vm0, %v739_v2 }
 0x24e   : > { %v723_v5 = vpop.permute.xlu2 %722 }
 0x24f   : > { %v736_v6 = vmul.f32 %v723_v5, %v712_v4 }
 0x251   : > { %v740_v7 = vadd.f32 %v736_v6, %v669_v61 }
 0x252   : > { %v762_v28 = vld [vmem:[#allocation4] sm:$0xff] }
 0x253   : > { %744 = vst.msk [vmem:[#allocation4 + $0x8] sm:$0xff] %vm439_vm0, %v740_v7 }
 0x25a   : > { %v763_v23 = vld [vmem:[#allocation4 + $0x8] sm:$0xff] }
 0x290   : > { %v784_v17 = vpop.permute.xlu2 %783 }
 0x291   : > { %v789_v18 = vmul.f32 %v784_v17, %v765_v16 }
 0x293   : > { %v793_v19 = vpack.c.bf16 %v789_v18, %v789_v18 }
 0x295   : > { %1088 = vmatmul.msk.bf16.vlgmr.msra.gmra.mxu3 %vm439_vm0, %v793_v19 }
 0x2a0   : > { %v779_v21 = vpop.permute.xlu0 %778 }
 0x2a1   : > { %v788_v22 = vmul.f32 %v779_v21, %v764_v20 }
 0x2a2   : > { %v774_v24 = vpop.permute.xlu2 %773 }
 0x2a3   : > { %v792_v25 = vpack.c.bf16 %v788_v22, %v788_v22  ;;  %v787_v26 = vmul.f32 %v774_v24, %v763_v23 }
 0x2a5   : > { %v791_v27 = vpack.c.bf16 %v787_v26, %v787_v26  ;;  %1087 = vmatmul.msk.bf16.vlgmr.msra.gmra.mxu2 %vm439_vm0, %v792_v25 }
 0x2a7   : > { %1086 = vmatmul.msk.bf16.vlgmr.msra.gmra.mxu1 %vm439_vm0, %v791_v27 }
 0x2b2   : > { %v769_v29 = vpop.permute.xlu1 %768 }
 0x2b3   : > { %v786_v30 = vmul.f32 %v769_v29, %v762_v28 }
 0x2b5   : > { %v790_v31 = vpack.c.bf16 %v786_v30, %v786_v30 }
 0x2b7   : > { %1085 = vmatmul.msk.bf16.vlgmr.msra.gmra.mxu0 %vm439_vm0, %v790_v31 }
 0x318   : > { %v880_v32 = vpop.f32.mrf.mxu3 }
 0x320   : > { %v882_v33 = vpop.f32.mrf.mxu3 }
 0x324   : > { %v836_v34 = vpop.f32.mrf.mxu1 }
 0x328   : > { %v858_v35 = vpop.f32.mrf.mxu2 }
 0x32c   : > { %v838_v36 = vpop.f32.mrf.mxu1 }
 0x330   : > { %v860_v37 = vpop.f32.mrf.mxu2 }
 0x334   : > { %v811_v39 = vpop.f32.mrf.mxu0 }
 0x335   : > { %v818_v40 = vadd.f32 %v1188_v38, %v811_v39 }
 0x337   : > { %v840_v41 = vadd.f32 %v836_v34, %v818_v40 }
 0x339   : > { %v862_v42 = vadd.f32 %v858_v35, %v840_v41 }
 0x33b   : > { %v884_v43 = vadd.f32 %v880_v32, %v862_v42 }
 0x33c   : > { %v813_v44 = vpop.f32.mrf.mxu0 }
 0x33d   : > { %886 = vst.msk [vmem:[%s418_s15] sm:$0xff] %vm885_vm3, %v884_v43 }
 0x33e   : > { %1360 = shalt.err (!%p1357_p3)
}
 0x33f   : > { %1106 = dma.vmem_to_hbm [thread:$0]  (%p1557_p0), %s902_s1, 128, %s904_s30, %s888_s7  }
 0x340 PF: > { %s1818_s4 = sld [smem:[#allocation19_spill]]  ;;  %s915_s10 = sand.u32 1, %s1403_s21  }
 0x341   : > { %p1123_p5 = pnand %p1061_p4, %p1561_p2  ;;  %s916_s18 = scalar_lea.sflag [#allocation7], %s915_s10 }
 0x343   : > { %p1124_p1 = pneg %p1123_p5 }
 0x345   : > { %1398 = dma.done.wait (%p1124_p1), %s916_s18, 128  }
 0x346   : > { %1400 = vsyncadd (%p1124_p1), %s916_s18, 4294967168  ;;  %s26_s26 = sadd.s32 1, %s1818_s4   ;;  %s1819_s20 = sld [smem:[#allocation21_spill]] }
 0x347   : > { %p23_p6 = scmp.ge.s32.totalorder %s26_s26, 4   ;;  %s1820_s24 = sld [smem:[#allocation18_spill]] }
 0x348   : > { %s1821_s25 = sld [smem:[#allocation20_spill]]  ;;  %s1822_s21 = smov %s1407_s22 }
 0x349   : > { %s1823_s22 = smov %s1411_s23  ;;  %25 = sbr.rel (!%p23_p6) target bundleno = 13 (0xd), region = 131 }
 0x34c   : > { %s1824_s23 = smov %s1819_s20 }
 0x34e   :  { %922 = vsyncpa [#allocation6], 1 }
 0x34f   :  { %924 = vsyncpa [#allocation6 + $0x1], 1 }
 0x350   :  { %925 = vsyncpa [#allocation9], 1 }
 0x351   :  { %927 = vsyncpa [#allocation9 + $0x1], 1 }
 0x352   :  { %928 = vsyncpa [#allocation12], 1 }
 0x353   :  { %929 = vsyncpa [#allocation7], 1 }
 0x354   :  { %931 = vsyncpa [#allocation7 + $0x1], 1 }

// kernel: tpu_custom_call.1
= control target key start
LH: loop header
LB: loop body
LE: loop exit
PB: predicated region body
PF: predicated region fallthrough
CT: control target
= control target key end

     0   :  { %s1784_s0 = inlined_call_operand.hbm [shape: bf16[2,4,8,8], index: 0, kind: input, shape index: {}]   ;;  %s1785_s1 = inlined_call_operand.hbm [shape: bf16[2,4,8,8], index: 1, kind: input, shape index: {}]   ;;  %s1786_s2 = inlined_call_operand.hbm [shape: bf16[2,4,8,8], index: 2, kind: input, shape index: {}]   ;;  %s1787_s3 = inlined_call_operand.vmem [shape: f32[2,1,8], index: 3, kind: input, shape index: {}]   ;;  %s1788_s4 = inlined_call_operand.hbm [shape: bf16[4,8,32], index: 4, kind: input, shape index: {}]   ;;  %s1789_s5 = inlined_call_operand.vmem [shape: f32[1,32], index: 5, kind: input, shape index: {}]   ;;  %s1790_s6 = inlined_call_operand.hbm [shape: f32[2,8,32], index: 6, kind: output, shape index: {}]  }
   0x1   :  { %1800 = sst [smem:[#allocation22_spill]] %s1784_s0 }
   0x2   :  { %1801 = sst [smem:[#allocation23_spill]] %s1785_s1 }
   0x3   :  { %1802 = sst [smem:[#allocation24_spill]] %s1788_s4 }
   0x4   :  { %11 = vsyncpa [#allocation6], 0 }
   0x5   :  { %13 = vsyncpa [#allocation6 + $0x1], 0 }
   0x6   :  { %14 = vsyncpa [#allocation9], 0 }
   0x7   :  { %16 = vsyncpa [#allocation9 + $0x1], 0 }
   0x8   :  { %17 = vsyncpa [#allocation12], 0 }
   0x9   :  { %18 = vsyncpa [#allocation7], 0 }
   0xa   :  { %20 = vsyncpa [#allocation7 + $0x1], 0  ;;  %s1466_s21 = smov 0   ;;  %s1468_s22 = smov 0  }
   0xb   :  { %s1470_s23 = smov 0   ;;  %s1472_s24 = smov 0  }
   0xc   :  { %s1474_s25 = smov 0   ;;  %s1476_s26 = smov 0  }
   0xd LB: > { %1803 = sst [smem:[#allocation18_spill]] %s1419_s25  ;;  %s45_s27 = sadd.s32 1, %s1419_s25  ;;  %s1423_s26 = sphi %s1476_s26, %s26_s26   ;;  %s1419_s25 = sphi %s1474_s25, %s1821_s25   ;;  %s1415_s24 = sphi %s1472_s24, %s1820_s24   ;;  %s1411_s23 = sphi %s1470_s23, %s1824_s23   ;;  %s1407_s22 = sphi %s1468_s22, %s1823_s22   ;;  %s1403_s21 = sphi %s1466_s21, %s1822_s21  }
   0xe   : > { %1804 = sst [smem:[#allocation19_spill]] %s1423_s26  ;;  %s54_s28 = sadd.s32 1, %s1411_s23 }
   0xf   : > { %p47_p0 = scmp.ge.s32.totalorder %s45_s27, 2  ;;  %p61_p1 = scmp.ne.s32.totalorder %s1411_s23, %s1407_s22 }
  0x10   : > { %p62_p2 = scmp.eq.s32.totalorder %s1423_s26, 0  ;;  %p1061_p4 = scmp.ge.s32.totalorder %s1423_s26, 2 }
  0x11   : > { %s1826_s27 = smov (%p47_p0, %s45_s27), 0  ;;  %p1127_p6 = scmp.lt.s32.totalorder %s1423_s26, 2 }
  0x12   : > { %1805 = sst [smem:[#allocation20_spill]] %s1826_s27  ;;  %p63_p3 = por %p62_p2, %p61_p1 }
  0x13   : > { %s49_s29 = ssub.s32 %s1419_s25, %s1826_s27  ;;  %s1791_s30 = sand.u32 1, %s1411_s23  }
  0x14   : > { %p52_p5 = scmp.eq.s32.totalorder %s49_s29, 0  ;;  %s1512_s7 = sshll.u32 %s1419_s25, 4 }
  0x15   : > { %s1519_s9 = sshll.u32 %s1791_s30, 4  ;;  %p1521_p7 = pnand %p1127_p6, %p63_p3 }
  0x16   : > { %s1515_s8 = scalar_select %p52_p5, %s1411_s23, %s54_s28  }
  0x17   : > { %s285_s11 = sand.u32 1, %s1423_s26   ;;  %s1808_s1 = sld [smem:[#allocation23_spill]] }
  0x18   : > { %1806 = sst [smem:[#allocation21_spill]] %s1515_s8  ;;  %s289_s15 = scalar_lea.vmem [#allocation8], %s1519_s9 }
  0x19   : > { %s298_s16 = sshll.u32 %s289_s15, 4  ;;  %s1531_s18 = scalar_lea.sflag [#allocation9], %s285_s11  ;;  %s299_s16 = int_to_ptr.vmem [resolvable:$true] %s298_s16 }
  0x1a   : > { %s1792_s19 = smov 64   ;;  %s1794_s20 = smov 4  }
  0x1b   : > { %s1540_s28 = sadd.s32 4294967295, %s1423_s26   ;;  %s1058_s29 = sadd.s32 4294967294, %s1423_s26  }
  0x1c   : > { %p67_p8 = scmp.ne.s32.totalorder %s1407_s22, %s1403_s21  ;;  %p68_p9 = scmp.eq.s32.totalorder %s1540_s28, 0 }
  0x1d   : > { %s295_s14 = scalar_lea.hbm %s1808_s1, %s1512_s7  ;;  %p219_p10 = scmp.eq.s32.totalorder %s1540_s28, 1 }
  0x1e   : > { %s296_s17 = sshll.u32 %s295_s14, 4  ;;  %p225_p11 = scmp.eq.s32.totalorder %s1058_s29, 1  ;;  %s297_s17 = int_to_ptr.hbm [resolvable:$true] %s296_s17 }
  0x1f   : > { %1118 = dma.hbm_to_vmem [thread:$0]  (!%p1521_p7), %s297_s17, 256, %s299_s16, %s1531_s18, %s1792_s19, %s1792_s19, %s1794_s20  }
  0x20   : > { %p1059_p12 = scmp.ge.s32.totalorder %s1423_s26, 1  ;;  %p1550_p13 = por %p68_p9, %p67_p8 }
  0x21   : > { %p1557_p0 = por %p219_p10, %p61_p1  ;;  %p1561_p2 = por %p225_p11, %p67_p8 }
  0x22   : > { %p232_p3 = scmp.lt.s32.totalorder %s1423_s26, 3  ;;  %s1812_s4 = sld [smem:[#allocation24_spill]] }
  0x23   : > { %s1427_s29 = smov [#allocation11]   ;;  %s1814_s0 = sld [smem:[#allocation22_spill]] }
  0x24   : > { %p1569_p5 = pnand %p1059_p12, %p232_p3  ;;  %s245_s30 = sshll.u32 %s1427_s29, 4  ;;  %s246_s30 = int_to_ptr.vmem [resolvable:$true] %s245_s30 }
  0x25   : > { %s266_s1 = scalar_lea.vmem [#allocation5], %s1519_s9  ;;  %s1815_s27 = smov 4  }
  0x26   : > { %p1108_p1 = pneg %p1569_p5  ;;  %s1816_s25 = smov 64  }
  0x27   : > { %s1817_s8 = sand.u32 1, %s1411_s23  }
  0x28   : > { %s243_s16 = sshll.u32 %s1812_s4, 4  ;;  %p1109_p6 = pnand %p1108_p1, %p68_p9  ;;  %s244_s16 = int_to_ptr.hbm [resolvable:$true] %s243_s16 }
  0x29   : > { %s272_s15 = scalar_lea.hbm %s1814_s0, %s1512_s7  ;;  %s275_s4 = sshll.u32 %s266_s1, 4  ;;  %s276_s4 = int_to_ptr.vmem [resolvable:$true] %s275_s4 }
  0x2a   : > { %s273_s20 = sshll.u32 %s272_s15, 4  ;;  %s263_s29 = scalar_lea.sflag [#allocation6], %s1817_s8  ;;  %s274_s20 = int_to_ptr.hbm [resolvable:$true] %s273_s20 }
  0x2b   : > { %1111 = dma.hbm_to_vmem [thread:$0]  (!%p1109_p6), %s244_s16, 256, %s246_s30, [#allocation12], %s1816_s25, %s1816_s25, %s1815_s27  }
  0x2c   : > { %1115 = dma.hbm_to_vmem [thread:$0]  (!%p1521_p7), %s274_s20, 256, %s276_s4, %s263_s29, %s1816_s25, %s1816_s25, %s1815_s27  }
  0x2d   : > { %s318_s0 = scalar_lea.hbm %s1786_s2, %s1512_s7  ;;  %s312_s15 = scalar_lea.vmem [#allocation10], %s1519_s9 }
  0x2e   : > { %s321_s26 = sshll.u32 %s312_s15, 4  ;;  %s319_s1 = sshll.u32 %s318_s0, 4  ;;  %s322_s26 = int_to_ptr.vmem [resolvable:$true] %s321_s26  ;;  %s320_s1 = int_to_ptr.hbm [resolvable:$true] %s319_s1 }
  0x2f   : > { %1121 = dma.hbm_to_vmem [thread:$0]  (!%p1521_p7), %s320_s1, 256, %s322_s26, %s1531_s18, %s1816_s25, %s1816_s25, %s1815_s27  }
  0x30   : > { %342 = sbr.rel (%p1569_p5) target bundleno = 832 (0x340), region = 44  ;;  %s1606_s4 = sand.u32 (!%p1569_p5), 1, %s1407_s22  }
  0x31   : > { %s1072_s30 = sshll.u32 (!%p1569_p5), %s1606_s4, 4  ;;  %s345_s7 = scalar_lea.sflag (!%p1569_p5), [#allocation6], %s1606_s4 }
  0x32   : > { %s348_s8 = scalar_lea.vmem (!%p1569_p5), [#allocation5], %s1072_s30 }
  0x35   : > { %1386 = dma.done.wait (%p1550_p13), %s345_s7, 256  }
  0x36   : > { %1388 = vsyncadd (%p1550_p13), %s345_s7, 4294967040  ;;  %s354_s0 = sand.u32 1, %s1540_s28   ;;  %s358_s26 = scalar_lea.vmem [#allocation8], %s1072_s30 }
  0x37   : > { %s355_s25 = scalar_lea.sflag [#allocation9], %s354_s0 }
  0x38   : > { %1390 = dma.done.wait (%p1550_p13), %s355_s25, 512  }
  0x39   : > { %1392 = vsyncadd (%p1550_p13), %s355_s25, 4294966784  ;;  %s1619_s27 = scalar_lea.vmem [#allocation10], %s1072_s30 }
  0x3a   : > { %1394 = dma.done.wait (%p68_p9), [#allocation12], 256  }
  0x3b   : > { %1396 = vsyncadd (%p68_p9), [#allocation12], 4294967040  ;;  %p419_p7 = scmp.lt.s32.totalorder %s1415_s24, 1  ;;  %vm439_vm0 = vcmask 64512   ;;  %v448_v0 = vld [vmem:[%s358_s26] sm:$0xf] }
  0x3c   : > { %v450_v1 = vld [vmem:[%s358_s26 + $0x8] sm:$0xf]  ;;  %v465_v2 = vsel %vm439_vm0, %v448_v0, 0  ;;  %v449_v4 = vld [vmem:[%s358_s26 + $0x4] sm:$0xf]  ;;  %vm430_vm1 = vcmask 7168  }
  0x3d   : > { %s420_s9 = scalar_select %p419_p7, %s1415_s24, 1  ;;  %v503_v3 = vsel %vm439_vm0, %v450_v1, 0  ;;  %474 = vmatpush.bf16.xpose.msra.mxu0 %v465_v2  ;;  %v484_v5 = vsel %vm439_vm0, %v449_v4, 0  ;;  %v451_v6 = vld [vmem:[%s358_s26 + $0xc] sm:$0xf]  ;;  %v1428_v12 = vmov -inf  }
  0x3e   : > { %512 = vmatpush.bf16.xpose.msra.mxu2 %v503_v3  ;;  %493 = vmatpush.bf16.xpose.msra.mxu1 %v484_v5  ;;  %v522_v7 = vsel %vm439_vm0, %v451_v6, 0  ;;  %v444_v8 = vld [vmem:[%s348_s8] sm:$0xf]  ;;  %v446_v9 = vld [vmem:[%s348_s8 + $0x8] sm:$0xf]  ;;  %431 = vst.msk [vmem:[#allocation2] sm:$0xff] %vm430_vm1, %v1428_v12 }
  0x3f   : > { %s424_s20 = scalar_lea.vmem %s1787_s3, %s420_s9  ;;  %531 = vmatpush.bf16.xpose.msra.mxu3 %v522_v7  ;;  %v445_v10 = vld [vmem:[%s348_s8 + $0x4] sm:$0xf]  ;;  %v447_v11 = vld [vmem:[%s348_s8 + $0xc] sm:$0xf]  ;;  %432 = vst.msk [vmem:[#allocation2 + $0x8] sm:$0xff] %vm430_vm1, %v1428_v12  ;;  %v1429_v30 = vmov 0  }
  0x40   : > { %433 = vst.msk [vmem:[#allocation2 + $0x10] sm:$0xff] %vm430_vm1, %v1428_v12  ;;  %v1187_v13 = vld [vmem:[%s424_s20] ss:$0 sm:$0xff]  ;;  %1185 = vset.pattern.permute.xlu0 %v1429_v30  ;;  %1184 = vset.pattern.permute.xlu2 %v1429_v30  ;;  %v1430_v31 = vmov 0.0   ;;  %v454_v48 = vld [vmem:[%s1619_s27 + $0x8] sm:$0xf] }
  0x41   : > { %434 = vst.msk [vmem:[#allocation2 + $0x18] sm:$0xff] %vm430_vm1, %v1428_v12  ;;  %1186 = vset.pattern.permute.xlu1 %v1429_v30  ;;  %vm637_vm2 = vcmask 1043456   ;;  %v455_v50 = vld [vmem:[%s1619_s27 + $0xc] sm:$0xf]  ;;  %v452_v52 = vld [vmem:[%s1619_s27] sm:$0xf] }
  0x42   : > { %437 = vst.msk [vmem:[#allocation3 + $0x10] sm:$0xff] %vm430_vm1, %v1430_v31  ;;  %v677_v49 = vsel %vm637_vm2, %v454_v48, 0  ;;  %v696_v51 = vsel %vm637_vm2, %v455_v50, 0  ;;  %v639_v53 = vsel %vm637_vm2, %v452_v52, 0  ;;  %v453_v55 = vld [vmem:[%s1619_s27 + $0x4] sm:$0xf] }
  0x43   : > { %435 = vst.msk [vmem:[#allocation3] sm:$0xff] %vm430_vm1, %v1430_v31  ;;  %v658_v57 = vsel %vm637_vm2, %v453_v55, 0  ;;  %s1076_s16 = sshll.u32 %s1606_s4, 3  ;;  %s1090_s17 = sshll.u32 %s1415_s24, 3  ;;  %vm885_vm3 = vcmask 261120  }
  0x44   : > { %1077 = vmatmul.msk.bf16.vlgmr.msra.gmra.mxu0 %vm439_vm0, %v444_v8  ;;  %436 = vst.msk [vmem:[#allocation3 + $0x8] sm:$0xff] %vm430_vm1, %v1430_v31  ;;  %s899_s14 = scalar_lea.hbm %s1790_s6, %s1090_s17  ;;  %s418_s15 = scalar_lea.vmem [#allocation13], %s1076_s16 }
  0x45   : > { %1079 = vmatmul.msk.bf16.vlgmr.msra.gmra.mxu2 %vm439_vm0, %v446_v9  ;;  %1078 = vmatmul.msk.bf16.vlgmr.msra.gmra.mxu1 %vm439_vm0, %v445_v10  ;;  %438 = vst.msk [vmem:[#allocation3 + $0x18] sm:$0xff] %vm430_vm1, %v1430_v31  ;;  %v1666_v32 = vld [vmem:[#allocation2] sm:$0xff]  ;;  %s901_s1 = sshll.u32 %s418_s15, 4  ;;  %s903_s30 = sshll.u32 %s899_s14, 4  ;;  %s902_s1 = int_to_ptr.vmem [resolvable:$true] %s901_s1  ;;  %s904_s30 = int_to_ptr.hbm [resolvable:$true] %s903_s30 }
  0x46   : > { %1080 = vmatmul.msk.bf16.vlgmr.msra.gmra.mxu3 %vm439_vm0, %v447_v11  ;;  %440 = vst.msk [vmem:[#allocation4] sm:$0xff] %vm439_vm0, %v1430_v31  ;;  %v1678_v38 = vld [vmem:[#allocation2 + $0x8] sm:$0xff]  ;;  %686 = vmatpush.bf16.msrb.mxu2 %v677_v49  ;;  %s888_s7 = scalar_lea.sflag [#allocation7], %s1606_s4  ;;  %s1347_s24 = sshra.s32 %s904_s30, 4  ;;  %s1348_s24 = int_to_ptr.hbm [resolvable:$true] %s1347_s24 }
  0x47   : > { %441 = vst.msk [vmem:[#allocation4 + $0x8] sm:$0xff] %vm439_vm0, %v1430_v31  ;;  %v1676_v36 = vld [vmem:[#allocation2 + $0x10] sm:$0xff]  ;;  %705 = vmatpush.bf16.msrb.mxu3 %v696_v51  ;;  %648 = vmatpush.bf16.msrb.mxu0 %v639_v53  ;;  %s1349_s8 = scalar_lea.hbm %s1348_s24, 8  ;;  %s1353_s26 = scalar_lea.hbm %s1790_s6, 16 }
  0x48   : > { %442 = vst.msk [vmem:[#allocation4 + $0x10] sm:$0xff] %vm439_vm0, %v1430_v31  ;;  %v540_v44 = vld [vmem:[#allocation2 + $0x18] sm:$0xff]  ;;  %667 = vmatpush.bf16.msrb.mxu1 %v658_v57  ;;  %p1350_p8 = scmp.ne.s32.totalorder %s1348_s24, %s1349_s8  ;;  %p1354_p11 = scmp.lt.s32.totalorder %s1348_s24, %s1790_s6 }
  0x49   : > { %443 = vst.msk [vmem:[#allocation4 + $0x18] sm:$0xff] %vm439_vm0, %v1430_v31  ;;  %p1355_p12 = scmp.lt.s32.totalorder %s1353_s26, %s1349_s8 }
  0x4a   : > { %p1351_p9 = pnand %p1350_p8, %p1557_p0 }
  0x4b   : > { %p1356_p13 = por %p1355_p12, %p1354_p11 }
  0x4c   : > { %p1352_p10 = pneg %p1351_p9 }
  0x4e   : > { %p1357_p3 = pnand %p1356_p13, %p1352_p10 }
  0x4f   : > { %v713_v51 = vld [vmem:[#allocation4 + $0x10] sm:$0xff] }
  0x50   : > { %v714_v49 = vld [vmem:[#allocation4 + $0x18] sm:$0xff] }
  0xc1   : > { %v476_v14 = vpop.f32.mrf.mxu0 }
  0xc2   : > { %v1642_v15 = vadd.f32 %v1187_v13, %v476_v14  ;;  %v495_v16 = vpop.f32.mrf.mxu1 }
  0xc3   : > { %v1646_v18 = vadd.f32 %v1187_v13, %v495_v16 }
  0xc4   : > { %v541_v17 = vsel %vm439_vm0, %v1642_v15, -inf }
  0xc5   : > { %542 = vmax.xlane.f32.xlu1 %v541_v17  ;;  %v544_v24 = vsel %vm439_vm0, %v1646_v18, -inf }
  0xc8   : > { %v514_v19 = vpop.f32.mrf.mxu2 }
  0xc9   : > { %v1648_v20 = vadd.f32 %v1187_v13, %v514_v19  ;;  %v478_v21 = vpop.f32.mrf.mxu0  ;;  %v533_v22 = vpop.f32.mrf.mxu3 }
  0xca   : > { %v497_v25 = vpop.f32.mrf.mxu1  ;;  %v1654_v26 = vadd.f32 %v1187_v13, %v533_v22 }
  0xcb   : > { %v547_v23 = vsel %vm439_vm0, %v1648_v20, -inf }
  0xcc   : > { %548 = vmax.xlane.f32.xlu0 %v547_v23  ;;  %v550_v28 = vsel %vm439_vm0, %v1654_v26, -inf }
  0xcd   : > { %545 = vmax.xlane.f32.xlu1 %v544_v24  ;;  %v603_v24 = vld [vmem:[#allocation3 + $0x10] sm:$0xff] }
  0xd0   : > { %v516_v27 = vpop.f32.mrf.mxu2 }
  0xd1   : > { %v535_v29 = vpop.f32.mrf.mxu3 }
  0xd4   : > { %551 = vmax.xlane.f32.xlu0 %v550_v28  ;;  %v604_v28 = vld [vmem:[#allocation3 + $0x18] sm:$0xff] }
 0x138   : > { %v543_v33 = vpop.xlane.xlu1 %542 }
 0x139   : > { %v1669_v34 = vmax.f32 %v1666_v32, %v543_v33  ;;  %v601_v33 = vld [vmem:[#allocation3] sm:$0xff] }
 0x13b   : > { %v557_v35 = vsub.f32 %v1666_v32, %v1669_v34  ;;  %747 = vst.msk [vmem:[#allocation2] sm:$0xff] %vm430_vm1, %v1669_v34  ;;  %571 = vperm.xlu0 %1185, %v1669_v34  }
 0x13d   : > { %v561_v19 = vmul.f32 1.442695, %v557_v35 }
 0x13f   : > { %v549_v37 = vpop.xlane.xlu0 %548 }
 0x140   : > { %v1681_v39 = vmax.f32 %v1676_v36, %v549_v37  ;;  %v546_v40 = vpop.xlane.xlu1 %545 }
 0x141   : > { %v1688_v42 = vmax.f32 %v1678_v38, %v546_v40  ;;  %v602_v40 = vld [vmem:[#allocation3 + $0x8] sm:$0xff] }
 0x142   : > { %v559_v41 = vsub.f32 %v1676_v36, %v1681_v39  ;;  %749 = vst.msk [vmem:[#allocation2 + $0x10] sm:$0xff] %vm430_vm1, %v1681_v39  ;;  %581 = vperm.xlu2 %1184, %v1681_v39  }
 0x143   : > { %v558_v43 = vsub.f32 %v1678_v38, %v1688_v42  ;;  %748 = vst.msk [vmem:[#allocation2 + $0x8] sm:$0xff] %vm430_vm1, %v1688_v42  ;;  %576 = vperm.xlu1 %1186, %v1688_v42  }
 0x145   : > { %v563_v21 = vmul.f32 1.442695, %v558_v43 }
 0x147   : > { %v552_v45 = vpop.xlane.xlu0 %551 }
 0x148   : > { %v556_v46 = vmax.f32 %v540_v44, %v552_v45 }
 0x14a   : > { %v560_v47 = vsub.f32 %v540_v44, %v556_v46  ;;  %750 = vst.msk [vmem:[#allocation2 + $0x18] sm:$0xff] %vm430_vm1, %v556_v46  ;;  %586 = vperm.xlu2 %1184, %v556_v46  }
 0x14c   : > { %v567_v13 = vmul.f32 1.442695, %v560_v47 }
 0x19c   : > { %v582_v54 = vpop.permute.xlu2 %581 }
 0x19d   : > { %v591_v56 = vsub.f32 %v1648_v20, %v582_v54 }
 0x19f   : > { %v597_v58 = vmul.f32 1.442695, %v591_v56 }
 0x1a1   : > { %1189 = vpow2.f32 %v597_v58 }
 0x1a4   : > { %v587_v59 = vpop.permute.xlu2 %586 }
 0x1a5   : > { %v592_v60 = vsub.f32 %v1654_v26, %v587_v59 }
 0x1a7   : > { %v1190_v61 = vpop.eup %1189  ;;  %v599_v62 = vmul.f32 1.442695, %v592_v60 }
 0x1a8   : > { %v615_v63 = vsel %vm439_vm0, %v1190_v61, 0.0  ;;  %v632_v0 = vpack.c.bf16 %v1190_v61, %v1190_v61 }
 0x1a9   : > { %1191 = vpow2.f32 %v599_v62  ;;  %616 = vadd.xlane.f32.xlu2 %v615_v63  ;;  %v711_v62 = vld [vmem:[#allocation4] sm:$0xff] }
 0x1aa   : > { %1083 = vmatmul.msk.bf16.vlgmr.msrb.gmra.mxu2 %vm439_vm0, %v632_v0 }
 0x1ad   : > { %v572_v1 = vpop.permute.xlu0 %571 }
 0x1ae   : > { %v589_v3 = vsub.f32 %v1642_v15, %v572_v1 }
 0x1af   : > { %v1192_v2 = vpop.eup %1191 }
 0x1b0   : > { %v618_v4 = vsel %vm439_vm0, %v1192_v2, 0.0  ;;  %v633_v5 = vpack.c.bf16 %v1192_v2, %v1192_v2  ;;  %v593_v6 = vmul.f32 1.442695, %v589_v3 }
 0x1b1   : > { %619 = vadd.xlane.f32.xlu1 %v618_v4  ;;  %v712_v4 = vld [vmem:[#allocation4 + $0x8] sm:$0xff] }
 0x1b2   : > { %1084 = vmatmul.msk.bf16.vlgmr.msrb.gmra.mxu3 %vm439_vm0, %v633_v5  ;;  %1193 = vpow2.f32 %v593_v6 }
 0x1b5   : > { %v577_v7 = vpop.permute.xlu1 %576 }
 0x1b6   : > { %v590_v8 = vsub.f32 %v1646_v18, %v577_v7  ;;  %v565_v18 = vmul.f32 1.442695, %v559_v41 }
 0x1b8   : > { %v1194_v9 = vpop.eup %1193  ;;  %v595_v10 = vmul.f32 1.442695, %v590_v8  ;;  %v864_v8 = vld [vmem:[#allocation11 + $0xc] sm:$0xf] }
 0x1b9   : > { %v609_v11 = vsel %vm439_vm0, %v1194_v9, 0.0  ;;  %v630_v12 = vpack.c.bf16 %v1194_v9, %v1194_v9  ;;  %v869_v9 = vsel %vm637_vm2, %v864_v8, 0 }
 0x1ba   : > { %1195 = vpow2.f32 %v595_v10  ;;  %610 = vadd.xlane.f32.xlu0 %v609_v11  ;;  %878 = vmatpush.bf16.msra.mxu3 %v869_v9  ;;  %v842_v10 = vld [vmem:[#allocation11 + $0x8] sm:$0xf] }
 0x1bb   : > { %1081 = vmatmul.msk.bf16.vlgmr.msrb.gmra.mxu0 %vm439_vm0, %v630_v12  ;;  %1197 = vpow2.f32 %v567_v13  ;;  %v847_v11 = vsel %vm637_vm2, %v842_v10, 0  ;;  %v820_v12 = vld [vmem:[#allocation11 + $0x4] sm:$0xf] }
 0x1bc   : > { %1199 = vpow2.f32 %v565_v18  ;;  %856 = vmatpush.bf16.msra.mxu2 %v847_v11  ;;  %v825_v13 = vsel %vm637_vm2, %v820_v12, 0 }
 0x1bd   : > { %1201 = vpow2.f32 %v561_v19  ;;  %834 = vmatpush.bf16.msra.mxu1 %v825_v13 }
 0x1be   : > { %1203 = vpow2.f32 %v563_v21 }
 0x1c0   : > { %v1196_v14 = vpop.eup %1195 }
 0x1c1   : > { %v612_v15 = vsel %vm439_vm0, %v1196_v14, 0.0  ;;  %v631_v16 = vpack.c.bf16 %v1196_v14, %v1196_v14  ;;  %v1198_v17 = vpop.eup %1197  ;;  %v795_v14 = vld [vmem:[#allocation11] sm:$0xf] }
 0x1c2   : > { %613 = vadd.xlane.f32.xlu2 %v612_v15  ;;  %v1200_v20 = vpop.eup %1199  ;;  %v608_v29 = vmul.f32 %v1198_v17, %v604_v28  ;;  %v800_v15 = vsel %vm637_vm2, %v795_v14, 0 }
 0x1c3   : > { %1082 = vmatmul.msk.bf16.vlgmr.msrb.gmra.mxu1 %vm439_vm0, %v631_v16  ;;  %v1202_v22 = vpop.eup %1201  ;;  %v607_v25 = vmul.f32 %v1200_v20, %v603_v24  ;;  %809 = vmatpush.bf16.msra.mxu0 %v800_v15 }
 0x1c4   : > { %v1204_v23 = vpop.eup %1203  ;;  %v605_v36 = vmul.f32 %v1202_v22, %v601_v33 }
 0x1c5   : > { %v606_v44 = vmul.f32 %v1204_v23, %v602_v40 }
 0x1ca   : > { %732 = vperm.xlu1 %1186, %v1198_v17  }
 0x1da   : > { %727 = vperm.xlu2 %1184, %v1200_v20  }
 0x1e2   : > { %717 = vperm.xlu2 %1184, %v1202_v22  }
 0x1ea   : > { %722 = vperm.xlu2 %1184, %v1204_v23  }
 0x21c   : > { %v617_v26 = vpop.xlane.xlu2 %616 }
 0x21d   : > { %v623_v27 = vadd.f32 %v617_v26, %v607_v25 }
 0x21f   : > { %628 = vst.msk [vmem:[#allocation3 + $0x10] sm:$0xff] %vm430_vm1, %v623_v27 }
 0x224   : > { %v620_v30 = vpop.xlane.xlu1 %619 }
 0x225   : > { %v624_v31 = vadd.f32 %v620_v30, %v608_v29 }
 0x226   : > { %v756_v32 = vld [vmem:[#allocation3 + $0x10] sm:$0xff] }
 0x227   : > { %629 = vst.msk [vmem:[#allocation3 + $0x18] sm:$0xff] %vm430_vm1, %v624_v31  ;;  %1205 = vrcp.f32 %v756_v32 }
 0x22d   : > { %v1206_v34 = vpop.eup %1205  ;;  %v688_v35 = vpop.f32.mrf.mxu2 }
 0x22e   : > { %778 = vperm.xlu0 %1185, %v1206_v34   ;;  %v611_v37 = vpop.xlane.xlu0 %610  ;;  %v757_v38 = vld [vmem:[#allocation3 + $0x18] sm:$0xff] }
 0x22f   : > { %v621_v39 = vadd.f32 %v611_v37, %v605_v36  ;;  %1207 = vrcp.f32 %v757_v38  ;;  %v1188_v38 = vld [vmem:[%s1789_s5] ss:$0 sm:$0xff] }
 0x231   : > { %626 = vst.msk [vmem:[#allocation3] sm:$0xff] %vm430_vm1, %v621_v39 }
 0x235   : > { %v1208_v41 = vpop.eup %1207  ;;  %v690_v42 = vpop.f32.mrf.mxu2 }
 0x236   : > { %v707_v43 = vpop.f32.mrf.mxu3  ;;  %v614_v45 = vpop.xlane.xlu2 %613  ;;  %783 = vperm.xlu2 %1184, %v1208_v41  }
 0x237   : > { %v622_v46 = vadd.f32 %v614_v45, %v606_v44 }
 0x238   : > { %v754_v47 = vld [vmem:[#allocation3] sm:$0xff]  ;;  %v650_v48 = vpop.f32.mrf.mxu0 }
 0x239   : > { %627 = vst.msk [vmem:[#allocation3 + $0x8] sm:$0xff] %vm430_vm1, %v622_v46  ;;  %1209 = vrcp.f32 %v754_v47 }
 0x23c   : > { %v733_v50 = vpop.permute.xlu1 %732 }
 0x23d   : > { %v738_v52 = vmul.f32 %v733_v50, %v714_v49 }
 0x23e   : > { %v709_v53 = vpop.f32.mrf.mxu3  ;;  %v728_v54 = vpop.permute.xlu2 %727 }
 0x23f   : > { %v1210_v55 = vpop.eup %1209  ;;  %v742_v56 = vadd.f32 %v738_v52, %v707_v43  ;;  %v737_v57 = vmul.f32 %v728_v54, %v713_v51 }
 0x240   : > { %768 = vperm.xlu1 %1186, %v1210_v55   ;;  %v755_v58 = vld [vmem:[#allocation3 + $0x8] sm:$0xff]  ;;  %v652_v60 = vpop.f32.mrf.mxu0  ;;  %v669_v61 = vpop.f32.mrf.mxu1 }
 0x241   : > { %746 = vst.msk [vmem:[#allocation4 + $0x18] sm:$0xff] %vm439_vm0, %v742_v56  ;;  %v741_v59 = vadd.f32 %v737_v57, %v688_v35  ;;  %1211 = vrcp.f32 %v755_v58 }
 0x243   : > { %745 = vst.msk [vmem:[#allocation4 + $0x10] sm:$0xff] %vm439_vm0, %v741_v59 }
 0x246   : > { %v718_v63 = vpop.permute.xlu2 %717 }
 0x247   : > { %v1212_v0 = vpop.eup %1211  ;;  %v735_v1 = vmul.f32 %v718_v63, %v711_v62 }
 0x248   : > { %773 = vperm.xlu2 %1184, %v1212_v0   ;;  %v671_v3 = vpop.f32.mrf.mxu1  ;;  %v765_v16 = vld [vmem:[#allocation4 + $0x18] sm:$0xff] }
 0x249   : > { %v739_v2 = vadd.f32 %v735_v1, %v650_v48 }
 0x24a   : > { %v764_v20 = vld [vmem:[#allocation4 + $0x10] sm:$0xff] }
 0x24b   : > { %743 = vst.msk [vmem:[#allocation4] sm:$0xff] %vm439_vm0, %v739_v2 }
 0x24e   : > { %v723_v5 = vpop.permute.xlu2 %722 }
 0x24f   : > { %v736_v6 = vmul.f32 %v723_v5, %v712_v4 }
 0x251   : > { %v740_v7 = vadd.f32 %v736_v6, %v669_v61 }
 0x252   : > { %v762_v28 = vld [vmem:[#allocation4] sm:$0xff] }
 0x253   : > { %744 = vst.msk [vmem:[#allocation4 + $0x8] sm:$0xff] %vm439_vm0, %v740_v7 }
 0x25a   : > { %v763_v23 = vld [vmem:[#allocation4 + $0x8] sm:$0xff] }
 0x290   : > { %v784_v17 = vpop.permute.xlu2 %783 }
 0x291   : > { %v789_v18 = vmul.f32 %v784_v17, %v765_v16 }
 0x293   : > { %v793_v19 = vpack.c.bf16 %v789_v18, %v789_v18 }
 0x295   : > { %1088 = vmatmul.msk.bf16.vlgmr.msra.gmra.mxu3 %vm439_vm0, %v793_v19 }
 0x2a0   : > { %v779_v21 = vpop.permute.xlu0 %778 }
 0x2a1   : > { %v788_v22 = vmul.f32 %v779_v21, %v764_v20 }
 0x2a2   : > { %v774_v24 = vpop.permute.xlu2 %773 }
 0x2a3   : > { %v792_v25 = vpack.c.bf16 %v788_v22, %v788_v22  ;;  %v787_v26 = vmul.f32 %v774_v24, %v763_v23 }
 0x2a5   : > { %v791_v27 = vpack.c.bf16 %v787_v26, %v787_v26  ;;  %1087 = vmatmul.msk.bf16.vlgmr.msra.gmra.mxu2 %vm439_vm0, %v792_v25 }
 0x2a7   : > { %1086 = vmatmul.msk.bf16.vlgmr.msra.gmra.mxu1 %vm439_vm0, %v791_v27 }
 0x2b2   : > { %v769_v29 = vpop.permute.xlu1 %768 }
 0x2b3   : > { %v786_v30 = vmul.f32 %v769_v29, %v762_v28 }
 0x2b5   : > { %v790_v31 = vpack.c.bf16 %v786_v30, %v786_v30 }
 0x2b7   : > { %1085 = vmatmul.msk.bf16.vlgmr.msra.gmra.mxu0 %vm439_vm0, %v790_v31 }
 0x318   : > { %v880_v32 = vpop.f32.mrf.mxu3 }
 0x320   : > { %v882_v33 = vpop.f32.mrf.mxu3 }
 0x324   : > { %v836_v34 = vpop.f32.mrf.mxu1 }
 0x328   : > { %v858_v35 = vpop.f32.mrf.mxu2 }
 0x32c   : > { %v838_v36 = vpop.f32.mrf.mxu1 }
 0x330   : > { %v860_v37 = vpop.f32.mrf.mxu2 }
 0x334   : > { %v811_v39 = vpop.f32.mrf.mxu0 }
 0x335   : > { %v818_v40 = vadd.f32 %v1188_v38, %v811_v39 }
 0x337   : > { %v840_v41 = vadd.f32 %v836_v34, %v818_v40 }
 0x339   : > { %v862_v42 = vadd.f32 %v858_v35, %v840_v41 }
 0x33b   : > { %v884_v43 = vadd.f32 %v880_v32, %v862_v42 }
 0x33c   : > { %v813_v44 = vpop.f32.mrf.mxu0 }
 0x33d   : > { %886 = vst.msk [vmem:[%s418_s15] sm:$0xff] %vm885_vm3, %v884_v43 }
 0x33e   : > { %1360 = shalt.err (!%p1357_p3)
}
 0x33f   : > { %1106 = dma.vmem_to_hbm [thread:$0]  (%p1557_p0), %s902_s1, 128, %s904_s30, %s888_s7  }
 0x340 PF: > { %s1818_s4 = sld [smem:[#allocation19_spill]]  ;;  %s915_s10 = sand.u32 1, %s1403_s21  }
 0x341   : > { %p1123_p5 = pnand %p1061_p4, %p1561_p2  ;;  %s916_s18 = scalar_lea.sflag [#allocation7], %s915_s10 }
 0x343   : > { %p1124_p1 = pneg %p1123_p5 }
 0x345   : > { %1398 = dma.done.wait (%p1124_p1), %s916_s18, 128  }
 0x346   : > { %1400 = vsyncadd (%p1124_p1), %s916_s18, 4294967168  ;;  %s26_s26 = sadd.s32 1, %s1818_s4   ;;  %s1819_s20 = sld [smem:[#allocation21_spill]] }
 0x347   : > { %p23_p6 = scmp.ge.s32.totalorder %s26_s26, 4   ;;  %s1820_s24 = sld [smem:[#allocation18_spill]] }
 0x348   : > { %s1821_s25 = sld [smem:[#allocation20_spill]]  ;;  %s1822_s21 = smov %s1407_s22 }
 0x349   : > { %s1823_s22 = smov %s1411_s23  ;;  %25 = sbr.rel (!%p23_p6) target bundleno = 13 (0xd), region = 131 }
 0x34c   : > { %s1824_s23 = smov %s1819_s20 }
 0x34e   :  { %922 = vsyncpa [#allocation6], 1 }
 0x34f   :  { %924 = vsyncpa [#allocation6 + $0x1], 1 }
 0x350   :  { %925 = vsyncpa [#allocation9], 1 }
 0x351   :  { %927 = vsyncpa [#allocation9 + $0x1], 1 }
 0x352   :  { %928 = vsyncpa [#allocation12], 1 }
 0x353   :  { %929 = vsyncpa [#allocation7], 1 }
 0x354   :  { %931 = vsyncpa [#allocation7 + $0x1], 1 }

</bundles_post_ra>
